<compile_context>
chip_gen: v6e
topology: v6e:2x2x1
jax: 0.10.0
libtpu: 0.0.40
codegen_flags: <defaults>
</compile_context>

<pallas_src>
import jax
import jax.numpy as jnp
from jax import lax
from jax.experimental import pallas as pl
from jax.experimental.pallas import tpu as pltpu


BN_EPS = 1e-5
NEG_INF = -1e30  # padded logit lanes -> exp() == 0 in log_softmax


def _round_up(x, m):
    return ((x + m - 1) // m) * m


# ---------------------------------------------------------------------------
# Kernel: dot+bias+relu, dot+bias+relu, dot+bias, log_softmax
# ---------------------------------------------------------------------------
def _classifier_kernel(x_ref, w1_ref, b1_ref, w2_ref, b2_ref, w3_ref, b3_ref,
                       o_ref):
    # Layer 1: Linear -> ReLU            (BN1 already folded into w2/b2)
    h = jnp.dot(x_ref[...], w1_ref[...],
                preferred_element_type=jnp.float32) + b1_ref[...]
    h = jnp.maximum(h, 0.0)

    # Layer 2: Linear -> ReLU            (BN2 already folded into w3/b3)
    h = jnp.dot(h.astype(jnp.bfloat16), w2_ref[...],
                preferred_element_type=jnp.float32) + b2_ref[...]
    h = jnp.maximum(h, 0.0)

    # Layer 3: Linear (lane-padded output columns; padded bias lanes hold
    # -1e30 so they vanish in the softmax normalizer).
    logits = jnp.dot(h.astype(jnp.bfloat16), w3_ref[...],
                     preferred_element_type=jnp.float32) + b3_ref[...]

    # log_softmax over dim=1
    m = jnp.max(logits, axis=1, keepdims=True)
    shifted = logits - m
    lse = jnp.log(jnp.sum(jnp.exp(shifted), axis=1, keepdims=True))
    o_ref[...] = (shifted - lse).astype(o_ref.dtype)


# ---------------------------------------------------------------------------
# Parameter prep: fold eval-mode BatchNorms into the next Linear, pad input
# and output widths to lane-dense multiples of 128, cast matmul weights bf16.
# ---------------------------------------------------------------------------
def fold_params(raw):
    s1 = raw["g1"] * lax.rsqrt(raw["rv1"] + BN_EPS)          # (1, 512)
    t1 = raw["be1"] - raw["rm1"] * s1                        # (1, 512)
    w2f = raw["w2"] * s1.reshape(-1, 1)                      # (512, 256)
    b2f = raw["b2"] + t1 @ raw["w2"]                         # (1, 256)

    s2 = raw["g2"] * lax.rsqrt(raw["rv2"] + BN_EPS)          # (1, 256)
    t2 = raw["be2"] - raw["rm2"] * s2                        # (1, 256)
    w3f = raw["w3"] * s2.reshape(-1, 1)                      # (256, C)
    b3f = raw["b3"] + t2 @ raw["w3"]                         # (1, C)

    # Pad layer-1 input width (zero weight rows <-> zero feature columns).
    c_in = raw["w1"].shape[0]
    c_in_pad = _round_up(c_in, 128)
    w1f = raw["w1"]
    if c_in_pad != c_in:
        w1f = jnp.pad(w1f, ((0, c_in_pad - c_in), (0, 0)))

    # Pad output width to a lane-dense multiple of 128.
    out_channels = w3f.shape[1]
    c_pad = _round_up(out_channels, 128)
    if c_pad != out_channels:
        w3f = jnp.pad(w3f, ((0, 0), (0, c_pad - out_channels)))
        b3f = jnp.pad(b3f, ((0, 0), (0, c_pad - out_channels)),
                      constant_values=NEG_INF)

    return dict(
        w1=w1f.astype(jnp.bfloat16), b1=raw["b1"],
        w2=w2f.astype(jnp.bfloat16), b2=b2f,
        w3=w3f.astype(jnp.bfloat16), b3=b3f,
        c_in=c_in, out_channels=out_channels,
    )


# ---------------------------------------------------------------------------
# Batch tiling: balanced tiles (minimal padding), >=2 grid steps when possible
# (v7x megacore), tile <= max_tile_b, tile a multiple of 8.
# ---------------------------------------------------------------------------
def _choose_batch_tiling(B, max_tile_b):
    max_tile_b = max(8, _round_up(max_tile_b, 8))
    num_tiles = max(pl.cdiv(B, max_tile_b), 2)       # >=2 steps for 2 TCs
    num_tiles = max(min(num_tiles, pl.cdiv(B, 8)), 1)  # but >=8 real rows/tile
    tile_b = _round_up(pl.cdiv(B, num_tiles), 8)
    return tile_b, num_tiles, tile_b * num_tiles


# ---------------------------------------------------------------------------
# Wrapper
# ---------------------------------------------------------------------------
def classifier_forward(feature, packed, *, max_tile_b=1024,
                       out_dtype=jnp.float32):
    """feature: (B, 2*feature_num), ideally bf16 (f32 is cast as a fallback).

    Returns the PADDED (b_pad, c_pad) log-prob block; the valid region is
    [:B, :packed["out_channels"]].  Slicing here would cost an extra HBM pass,
    so it is left to the consumer (which can fuse it).
    """
    w1, b1 = packed["w1"], packed["b1"]
    w2, b2 = packed["w2"], packed["b2"]
    w3, b3 = packed["w3"], packed["b3"]
    c_in_pad, h1 = w1.shape
    h2 = w2.shape[1]
    c_pad = w3.shape[1]

    B = feature.shape[0]
    # Callers should feed bf16 directly (cast fused into the upstream
    # producer); this cast is only a fallback.
    if feature.dtype != jnp.bfloat16:
        feature = feature.astype(jnp.bfloat16)
    if feature.shape[1] != c_in_pad:
        feature = jnp.pad(feature, ((0, 0), (0, c_in_pad - feature.shape[1])))

    tile_b, num_tiles, b_pad = _choose_batch_tiling(B, max_tile_b)
    if b_pad != B:
        feature = jnp.pad(feature, ((0, b_pad - B), (0, 0)))

    weight_bytes = sum(int(p.size) * p.dtype.itemsize
                       for p in (w1, b1, w2, b2, w3, b3))
    cost = pl.CostEstimate(
        flops=2 * b_pad * (c_in_pad * h1 + h1 * h2 + h2 * c_pad),
        transcendentals=b_pad * (c_pad + 1),
        bytes_accessed=(b_pad * c_in_pad * feature.dtype.itemsize
                        + weight_bytes
                        + b_pad * c_pad * jnp.dtype(out_dtype).itemsize),
    )

    def run(single_buffer_weights):
        if single_buffer_weights:
            # Constant index_map => never re-fetched; one VMEM buffer suffices.
            def wspec(shape):
                return pl.BlockSpec(shape, lambda i: (0, 0),
                                    pipeline_mode=pl.Buffered(1))
        else:
            def wspec(shape):
                return pl.BlockSpec(shape, lambda i: (0, 0))

        return pl.pallas_call(
            _classifier_kernel,
            out_shape=jax.ShapeDtypeStruct((b_pad, c_pad), out_dtype),
            grid=(num_tiles,),
            in_specs=[
                pl.BlockSpec((tile_b, c_in_pad), lambda i: (i, 0)),  # tiled acts
                wspec((c_in_pad, h1)),                               # weights /
                wspec((1, h1)),                                      # biases stay
                wspec((h1, h2)),                                     # VMEM-resident
                wspec((1, h2)),
                wspec((h2, c_pad)),
                wspec((1, c_pad)),
            ],
            out_specs=pl.BlockSpec((tile_b, c_pad), lambda i: (i, 0)),
            compiler_params=pltpu.CompilerParams(
                dimension_semantics=("parallel",),
                vmem_limit_bytes=32 << 20),   # big tiles also fit v5e scoped VMEM
            cost_estimate=cost,
        )(feature, w1, b1, w2, b2, w3, b3)

    try:
        return run(single_buffer_weights=True)
    except Exception:
        # pipeline_mode / Buffered(1) unsupported on this jax version:
        # fall back to default double buffering (pure perf, same semantics).
        return run(single_buffer_weights=False)


# ---------------------------------------------------------------------------
# Deterministic synthetic parameters (non-trivial BN stats exercise the fold)
# ---------------------------------------------------------------------------
def init_raw_params(key, feature_num, out_channels):
    c_in = 2 * feature_num
    ks = jax.random.split(key, 14)

    def lin_init(kw, kb, fan_in, fan_out):
        bound = 1.0 / jnp.sqrt(fan_in)
        w = jax.random.uniform(kw, (fan_in, fan_out), jnp.float32, -bound, bound)
        b = jax.random.uniform(kb, (1, fan_out), jnp.float32, -bound, bound)
        return w, b

    def bn_init(kg, kb, km, kv, n):
        g = jax.random.uniform(kg, (1, n), jnp.float32, 0.5, 1.5)
        be = 0.1 * jax.random.normal(kb, (1, n), jnp.float32)
        rm = 0.1 * jax.random.normal(km, (1, n), jnp.float32)
        rv = jax.random.uniform(kv, (1, n), jnp.float32, 0.5, 1.5)
        return g, be, rm, rv

    w1, b1 = lin_init(ks[0], ks[1], c_in, 512)
    w2, b2 = lin_init(ks[2], ks[3], 512, 256)
    w3, b3 = lin_init(ks[4], ks[5], 256, out_channels)
    g1, be1, rm1, rv1 = bn_init(ks[6], ks[7], ks[8], ks[9], 512)
    g2, be2, rm2, rv2 = bn_init(ks[10], ks[11], ks[12], ks[13], 256)

    return dict(w1=w1, b1=b1, g1=g1, be1=be1, rm1=rm1, rv1=rv1,
                w2=w2, b2=b2, g2=g2, be2=be2, rm2=rm2, rv2=rv2,
                w3=w3, b3=b3)


# ---------------------------------------------------------------------------
# Pure-JAX references
# ---------------------------------------------------------------------------
def reference_forward_f32(feature, p):
    """Original module structure (Linear->ReLU->BN), all f32."""
    h = feature @ p["w1"] + p["b1"]
    h = jnp.maximum(h, 0.0)
    h = (h - p["rm1"]) / jnp.sqrt(p["rv1"] + BN_EPS) * p["g1"] + p["be1"]
    h = h @ p["w2"] + p["b2"]
    h = jnp.maximum(h, 0.0)
    h = (h - p["rm2"]) / jnp.sqrt(p["rv2"] + BN_EPS) * p["g2"] + p["be2"]
    logits = h @ p["w3"] + p["b3"]
    return jax.nn.log_softmax(logits, axis=1)


def reference_forward_bf16(feature_bf16, packed):
    """Mirror of the folded / bf16-matmul computation done in the kernel."""
    def mm(a, w):
        return jnp.dot(a.astype(jnp.bfloat16), w,
                       preferred_element_type=jnp.float32)
    x = feature_bf16
    c_in_pad = packed["w1"].shape[0]
    if x.shape[1] != c_in_pad:
        x = jnp.pad(x, ((0, 0), (0, c_in_pad - x.shape[1])))
    h = jnp.maximum(mm(x, packed["w1"]) + packed["b1"], 0.0)
    h = jnp.maximum(mm(h, packed["w2"]) + packed["b2"], 0.0)
    logits = mm(h, packed["w3"]) + packed["b3"]
    lp = jax.nn.log_softmax(logits, axis=1)
    return lp[:, :packed["out_channels"]]


if __name__ == "__main__":
    # Small shapes consistent with the module: feature_num scaled down to 64,
    # so feature is (batch, 2*feature_num) = (8, 128); hidden dims kept at the
    # module's literal 512 / 256; out_channels = 10.
    feature_num = 64
    out_channels = 10
    batch = 8

    key = jax.random.PRNGKey(0)
    k_x, k_p, k_x2 = jax.random.split(key, 3)
    feature_f32 = jax.random.normal(k_x, (batch, 2 * feature_num), jnp.float32)
    raw = init_raw_params(k_p, feature_num, out_channels)
    packed = fold_params(raw)

    # Upstream producer emits bf16 (cast done once, outside the kernel path).
    feature_bf16 = feature_f32.astype(jnp.bfloat16)

    out_padded = classifier_forward(feature_bf16, packed)
    out_padded = jax.block_until_ready(out_padded)
    out = out_padded[:batch, :out_channels]          # consumer-side slice
    assert out.shape == (batch, out_channels)

    # Tight check vs. a pure-JAX mirror of the same folded / bf16 computation.
    ref_bf16 = reference_forward_bf16(feature_bf16, packed)
    assert jnp.allclose(out, ref_bf16, atol=2e-3, rtol=2e-3), \
        "mismatch vs bf16 mirrored reference"

    # Looser check vs. full-f32 original-structure semantics (bf16 noise).
    ref_f32 = reference_forward_f32(feature_f32, raw)
    assert jnp.allclose(out, ref_f32, atol=7e-2, rtol=7e-2), \
        "mismatch vs f32 reference"

    # log-probabilities must normalize.
    assert jnp.allclose(jnp.sum(jnp.exp(out), axis=1), 1.0, atol=1e-3)

    # Second run with a non-multiple batch to exercise balanced tiling
    # (grid of 2 steps, <8 rows of padding per tile).
    batch2 = 20
    f2_f32 = jax.random.normal(k_x2, (batch2, 2 * feature_num), jnp.float32)
    out2_padded = jax.block_until_ready(
        classifier_forward(f2_f32.astype(jnp.bfloat16), packed))
    out2 = out2_padded[:batch2, :out_channels]
    ref2 = reference_forward_f32(f2_f32, raw)
    assert out2.shape == (batch2, out_channels)
    assert jnp.allclose(out2, ref2, atol=7e-2, rtol=7e-2), \
        "mismatch vs f32 reference (tiled batch)"

    print("KERNEL_OK")
</pallas_src>

<mosaic_0001>
module attributes {stable_mosaic.version = 11 : i64} {
  func.func @_classifier_kernel(%arg0: i32, %arg1: memref<8x128xbf16, #tpu.memory_space<vmem>>, %arg2: memref<128x512xbf16, #tpu.memory_space<vmem>>, %arg3: memref<1x512xf32, #tpu.memory_space<vmem>>, %arg4: memref<512x256xbf16, #tpu.memory_space<vmem>>, %arg5: memref<1x256xf32, #tpu.memory_space<vmem>>, %arg6: memref<256x128xbf16, #tpu.memory_space<vmem>>, %arg7: memref<1x128xf32, #tpu.memory_space<vmem>>, %arg8: memref<8x128xf32, #tpu.memory_space<vmem>>) attributes {dimension_semantics = [#tpu.dimension_semantics<parallel>], iteration_bounds = array<i64: 1>, scalar_prefetch = 0 : i64, scratch_operands = 0 : i64, tpu.core_type = #tpu.core_type<tc>, window_params = [{transform_indices = @transform_0, window_bounds = array<i64: 8, 128>}, {pipeline_mode = #tpu.pipeline_mode<synchronous>, transform_indices = @transform_1, window_bounds = array<i64: 128, 512>}, {pipeline_mode = #tpu.pipeline_mode<synchronous>, transform_indices = @transform_2, window_bounds = array<i64: 1, 512>}, {pipeline_mode = #tpu.pipeline_mode<synchronous>, transform_indices = @transform_3, window_bounds = array<i64: 512, 256>}, {pipeline_mode = #tpu.pipeline_mode<synchronous>, transform_indices = @transform_4, window_bounds = array<i64: 1, 256>}, {pipeline_mode = #tpu.pipeline_mode<synchronous>, transform_indices = @transform_5, window_bounds = array<i64: 256, 128>}, {pipeline_mode = #tpu.pipeline_mode<synchronous>, transform_indices = @transform_6, window_bounds = array<i64: 1, 128>}, {transform_indices = @transform_7, window_bounds = array<i64: 8, 128>}]} {
    %c0 = arith.constant 0 : index
    %c0_0 = arith.constant 0 : index
    %0 = vector.load %arg1[%c0, %c0_0] : memref<8x128xbf16, #tpu.memory_space<vmem>>, vector<8x128xbf16>
    %c0_1 = arith.constant 0 : index
    %c0_2 = arith.constant 0 : index
    %1 = vector.load %arg2[%c0_1, %c0_2] : memref<128x512xbf16, #tpu.memory_space<vmem>>, vector<128x512xbf16>
    %cst = arith.constant dense<0.000000e+00> : vector<8x512xf32>
    %2 = tpu.matmul %0, %1, %cst {dimension_numbers = #tpu.dot_dimension_numbers<[1], [0], [0], [1], [0, 0, 1, 1], [], []>} : vector<8x128xbf16>, vector<128x512xbf16>, vector<8x512xf32> -> vector<8x512xf32>
    %c0_3 = arith.constant 0 : index
    %c0_4 = arith.constant 0 : index
    %3 = vector.load %arg3[%c0_3, %c0_4] : memref<1x512xf32, #tpu.memory_space<vmem>>, vector<1x512xf32>
    %4 = vector.broadcast %3 : vector<1x512xf32> to vector<8x512xf32>
    %5 = arith.addf %2, %4 : vector<8x512xf32>
    %cst_5 = arith.constant 0.000000e+00 : f32
    %6 = vector.broadcast %cst_5 : f32 to vector<8x512xf32>
    %7 = arith.maximumf %5, %6 : vector<8x512xf32>
    %8 = arith.truncf %7 : vector<8x512xf32> to vector<8x512xbf16>
    %c0_6 = arith.constant 0 : index
    %c0_7 = arith.constant 0 : index
    %9 = vector.load %arg4[%c0_6, %c0_7] : memref<512x256xbf16, #tpu.memory_space<vmem>>, vector<512x256xbf16>
    %cst_8 = arith.constant dense<0.000000e+00> : vector<8x256xf32>
    %10 = tpu.matmul %8, %9, %cst_8 {dimension_numbers = #tpu.dot_dimension_numbers<[1], [0], [0], [1], [0, 0, 1, 1], [], []>} : vector<8x512xbf16>, vector<512x256xbf16>, vector<8x256xf32> -> vector<8x256xf32>
    %c0_9 = arith.constant 0 : index
    %c0_10 = arith.constant 0 : index
    %11 = vector.load %arg5[%c0_9, %c0_10] : memref<1x256xf32, #tpu.memory_space<vmem>>, vector<1x256xf32>
    %12 = vector.broadcast %11 : vector<1x256xf32> to vector<8x256xf32>
    %13 = arith.addf %10, %12 : vector<8x256xf32>
    %cst_11 = arith.constant 0.000000e+00 : f32
    %14 = vector.broadcast %cst_11 : f32 to vector<8x256xf32>
    %15 = arith.maximumf %13, %14 : vector<8x256xf32>
    %16 = arith.truncf %15 : vector<8x256xf32> to vector<8x256xbf16>
    %c0_12 = arith.constant 0 : index
    %c0_13 = arith.constant 0 : index
    %17 = vector.load %arg6[%c0_12, %c0_13] : memref<256x128xbf16, #tpu.memory_space<vmem>>, vector<256x128xbf16>
    %cst_14 = arith.constant dense<0.000000e+00> : vector<8x128xf32>
    %18 = tpu.matmul %16, %17, %cst_14 {dimension_numbers = #tpu.dot_dimension_numbers<[1], [0], [0], [1], [0, 0, 1, 1], [], []>} : vector<8x256xbf16>, vector<256x128xbf16>, vector<8x128xf32> -> vector<8x128xf32>
    %c0_15 = arith.constant 0 : index
    %c0_16 = arith.constant 0 : index
    %19 = vector.load %arg7[%c0_15, %c0_16] : memref<1x128xf32, #tpu.memory_space<vmem>>, vector<1x128xf32>
    %20 = vector.broadcast %19 : vector<1x128xf32> to vector<8x128xf32>
    %21 = arith.addf %18, %20 : vector<8x128xf32>
    %cst_17 = arith.constant dense<0xFF800000> : vector<8xf32>
    %22 = vector.multi_reduction <maximumf>, %21, %cst_17 [1] : vector<8x128xf32> to vector<8xf32>
    %23 = vector.shape_cast %22 : vector<8xf32> to vector<8x1xf32>
    %24 = vector.broadcast %23 : vector<8x1xf32> to vector<8x128xf32>
    %25 = arith.subf %21, %24 : vector<8x128xf32>
    %26 = math.exp %25 : vector<8x128xf32>
    %cst_18 = arith.constant dense<0.000000e+00> : vector<8xf32>
    %27 = vector.multi_reduction <add>, %26, %cst_18 [1] : vector<8x128xf32> to vector<8xf32>
    %28 = vector.shape_cast %27 : vector<8xf32> to vector<8x1xf32>
    %29 = math.log %28 : vector<8x1xf32>
    %30 = vector.broadcast %29 : vector<8x1xf32> to vector<8x128xf32>
    %31 = arith.subf %25, %30 : vector<8x128xf32>
    %c0_19 = arith.constant 0 : index
    %c0_20 = arith.constant 0 : index
    %32 = vector.load %arg8[%c0_19, %c0_20] : memref<8x128xf32, #tpu.memory_space<vmem>>, vector<8x128xf32>
    tpu.vector_store %arg8[%c0_19, %c0_20], %31 {strides = array<i32>} : memref<8x128xf32, #tpu.memory_space<vmem>>, vector<8x128xf32>,
    return
  }
  func.func @transform_0(%arg0: i32) -> (i32, i32) {
    %c0_i32 = arith.constant 0 : i32
    %c0_i32_0 = arith.constant 0 : i32
    return %arg0, %c0_i32 : i32, i32
  }
  func.func @transform_1(%arg0: i32) -> (i32, i32) {
    %c0_i32 = arith.constant 0 : i32
    %c0_i32_0 = arith.constant 0 : i32
    %c0_i32_1 = arith.constant 0 : i32
    return %c0_i32, %c0_i32_0 : i32, i32
  }
  func.func @transform_2(%arg0: i32) -> (i32, i32) {
    %c0_i32 = arith.constant 0 : i32
    %c0_i32_0 = arith.constant 0 : i32
    %c0_i32_1 = arith.constant 0 : i32
    return %c0_i32, %c0_i32_0 : i32, i32
  }
  func.func @transform_3(%arg0: i32) -> (i32, i32) {
    %c0_i32 = arith.constant 0 : i32
    %c0_i32_0 = arith.constant 0 : i32
    %c0_i32_1 = arith.constant 0 : i32
    return %c0_i32, %c0_i32_0 : i32, i32
  }
  func.func @transform_4(%arg0: i32) -> (i32, i32) {
    %c0_i32 = arith.constant 0 : i32
    %c0_i32_0 = arith.constant 0 : i32
    %c0_i32_1 = arith.constant 0 : i32
    return %c0_i32, %c0_i32_0 : i32, i32
  }
  func.func @transform_5(%arg0: i32) -> (i32, i32) {
    %c0_i32 = arith.constant 0 : i32
    %c0_i32_0 = arith.constant 0 : i32
    %c0_i32_1 = arith.constant 0 : i32
    return %c0_i32, %c0_i32_0 : i32, i32
  }
  func.func @transform_6(%arg0: i32) -> (i32, i32) {
    %c0_i32 = arith.constant 0 : i32
    %c0_i32_0 = arith.constant 0 : i32
    %c0_i32_1 = arith.constant 0 : i32
    return %c0_i32, %c0_i32_0 : i32, i32
  }
  func.func @transform_7(%arg0: i32) -> (i32, i32) {
    %c0_i32 = arith.constant 0 : i32
    %c0_i32_0 = arith.constant 0 : i32
    return %arg0, %c0_i32 : i32, i32
  }
}

module attributes {stable_mosaic.version = 11 : i64} {
  func.func @_classifier_kernel(%arg0: i32, %arg1: memref<8x128xbf16, #tpu.memory_space<vmem>>, %arg2: memref<128x512xbf16, #tpu.memory_space<vmem>>, %arg3: memref<1x512xf32, #tpu.memory_space<vmem>>, %arg4: memref<512x256xbf16, #tpu.memory_space<vmem>>, %arg5: memref<1x256xf32, #tpu.memory_space<vmem>>, %arg6: memref<256x128xbf16, #tpu.memory_space<vmem>>, %arg7: memref<1x128xf32, #tpu.memory_space<vmem>>, %arg8: memref<8x128xf32, #tpu.memory_space<vmem>>) attributes {dimension_semantics = [#tpu.dimension_semantics<parallel>], iteration_bounds = array<i64: 1>, scalar_prefetch = 0 : i64, scratch_operands = 0 : i64, tpu.core_type = #tpu.core_type<tc>, window_params = [{transform_indices = @transform_0, window_bounds = array<i64: 8, 128>}, {pipeline_mode = #tpu.pipeline_mode<synchronous>, transform_indices = @transform_1, window_bounds = array<i64: 128, 512>}, {pipeline_mode = #tpu.pipeline_mode<synchronous>, transform_indices = @transform_2, window_bounds = array<i64: 1, 512>}, {pipeline_mode = #tpu.pipeline_mode<synchronous>, transform_indices = @transform_3, window_bounds = array<i64: 512, 256>}, {pipeline_mode = #tpu.pipeline_mode<synchronous>, transform_indices = @transform_4, window_bounds = array<i64: 1, 256>}, {pipeline_mode = #tpu.pipeline_mode<synchronous>, transform_indices = @transform_5, window_bounds = array<i64: 256, 128>}, {pipeline_mode = #tpu.pipeline_mode<synchronous>, transform_indices = @transform_6, window_bounds = array<i64: 1, 128>}, {transform_indices = @transform_7, window_bounds = array<i64: 8, 128>}]} {
    %c0 = arith.constant 0 : index
    %c0_0 = arith.constant 0 : index
    %0 = vector.load %arg1[%c0, %c0_0] : memref<8x128xbf16, #tpu.memory_space<vmem>>, vector<8x128xbf16>
    %c0_1 = arith.constant 0 : index
    %c0_2 = arith.constant 0 : index
    %1 = vector.load %arg2[%c0_1, %c0_2] : memref<128x512xbf16, #tpu.memory_space<vmem>>, vector<128x512xbf16>
    %cst = arith.constant dense<0.000000e+00> : vector<8x512xf32>
    %2 = tpu.matmul %0, %1, %cst {dimension_numbers = #tpu.dot_dimension_numbers<[1], [0], [0], [1], [0, 0, 1, 1], [], []>} : vector<8x128xbf16>, vector<128x512xbf16>, vector<8x512xf32> -> vector<8x512xf32>
    %c0_3 = arith.constant 0 : index
    %c0_4 = arith.constant 0 : index
    %3 = vector.load %arg3[%c0_3, %c0_4] : memref<1x512xf32, #tpu.memory_space<vmem>>, vector<1x512xf32>
    %4 = vector.broadcast %3 : vector<1x512xf32> to vector<8x512xf32>
    %5 = arith.addf %2, %4 : vector<8x512xf32>
    %cst_5 = arith.constant 0.000000e+00 : f32
    %6 = vector.broadcast %cst_5 : f32 to vector<8x512xf32>
    %7 = arith.maximumf %5, %6 : vector<8x512xf32>
    %8 = arith.truncf %7 : vector<8x512xf32> to vector<8x512xbf16>
    %c0_6 = arith.constant 0 : index
    %c0_7 = arith.constant 0 : index
    %9 = vector.load %arg4[%c0_6, %c0_7] : memref<512x256xbf16, #tpu.memory_space<vmem>>, vector<512x256xbf16>
    %cst_8 = arith.constant dense<0.000000e+00> : vector<8x256xf32>
    %10 = tpu.matmul %8, %9, %cst_8 {dimension_numbers = #tpu.dot_dimension_numbers<[1], [0], [0], [1], [0, 0, 1, 1], [], []>} : vector<8x512xbf16>, vector<512x256xbf16>, vector<8x256xf32> -> vector<8x256xf32>
    %c0_9 = arith.constant 0 : index
    %c0_10 = arith.constant 0 : index
    %11 = vector.load %arg5[%c0_9, %c0_10] : memref<1x256xf32, #tpu.memory_space<vmem>>, vector<1x256xf32>
    %12 = vector.broadcast %11 : vector<1x256xf32> to vector<8x256xf32>
    %13 = arith.addf %10, %12 : vector<8x256xf32>
    %cst_11 = arith.constant 0.000000e+00 : f32
    %14 = vector.broadcast %cst_11 : f32 to vector<8x256xf32>
    %15 = arith.maximumf %13, %14 : vector<8x256xf32>
    %16 = arith.truncf %15 : vector<8x256xf32> to vector<8x256xbf16>
    %c0_12 = arith.constant 0 : index
    %c0_13 = arith.constant 0 : index
    %17 = vector.load %arg6[%c0_12, %c0_13] : memref<256x128xbf16, #tpu.memory_space<vmem>>, vector<256x128xbf16>
    %cst_14 = arith.constant dense<0.000000e+00> : vector<8x128xf32>
    %18 = tpu.matmul %16, %17, %cst_14 {dimension_numbers = #tpu.dot_dimension_numbers<[1], [0], [0], [1], [0, 0, 1, 1], [], []>} : vector<8x256xbf16>, vector<256x128xbf16>, vector<8x128xf32> -> vector<8x128xf32>
    %c0_15 = arith.constant 0 : index
    %c0_16 = arith.constant 0 : index
    %19 = vector.load %arg7[%c0_15, %c0_16] : memref<1x128xf32, #tpu.memory_space<vmem>>, vector<1x128xf32>
    %20 = vector.broadcast %19 : vector<1x128xf32> to vector<8x128xf32>
    %21 = arith.addf %18, %20 : vector<8x128xf32>
    %cst_17 = arith.constant dense<0xFF800000> : vector<8xf32>
    %22 = vector.multi_reduction <maximumf>, %21, %cst_17 [1] : vector<8x128xf32> to vector<8xf32>
    %23 = vector.shape_cast %22 : vector<8xf32> to vector<8x1xf32>
    %24 = vector.broadcast %23 : vector<8x1xf32> to vector<8x128xf32>
    %25 = arith.subf %21, %24 : vector<8x128xf32>
    %26 = math.exp %25 : vector<8x128xf32>
    %cst_18 = arith.constant dense<0.000000e+00> : vector<8xf32>
    %27 = vector.multi_reduction <add>, %26, %cst_18 [1] : vector<8x128xf32> to vector<8xf32>
    %28 = vector.shape_cast %27 : vector<8xf32> to vector<8x1xf32>
    %29 = math.log %28 : vector<8x1xf32>
    %30 = vector.broadcast %29 : vector<8x1xf32> to vector<8x128xf32>
    %31 = arith.subf %25, %30 : vector<8x128xf32>
    %c0_19 = arith.constant 0 : index
    %c0_20 = arith.constant 0 : index
    %32 = vector.load %arg8[%c0_19, %c0_20] : memref<8x128xf32, #tpu.memory_space<vmem>>, vector<8x128xf32>
    tpu.vector_store %arg8[%c0_19, %c0_20], %31 {strides = array<i32>} : memref<8x128xf32, #tpu.memory_space<vmem>>, vector<8x128xf32>,
    return
  }
  func.func @transform_0(%arg0: i32) -> (i32, i32) {
    %c0_i32 = arith.constant 0 : i32
    %c0_i32_0 = arith.constant 0 : i32
    return %arg0, %c0_i32 : i32, i32
  }
  func.func @transform_1(%arg0: i32) -> (i32, i32) {
    %c0_i32 = arith.constant 0 : i32
    %c0_i32_0 = arith.constant 0 : i32
    %c0_i32_1 = arith.constant 0 : i32
    return %c0_i32, %c0_i32_0 : i32, i32
  }
  func.func @transform_2(%arg0: i32) -> (i32, i32) {
    %c0_i32 = arith.constant 0 : i32
    %c0_i32_0 = arith.constant 0 : i32
    %c0_i32_1 = arith.constant 0 : i32
    return %c0_i32, %c0_i32_0 : i32, i32
  }
  func.func @transform_3(%arg0: i32) -> (i32, i32) {
    %c0_i32 = arith.constant 0 : i32
    %c0_i32_0 = arith.constant 0 : i32
    %c0_i32_1 = arith.constant 0 : i32
    return %c0_i32, %c0_i32_0 : i32, i32
  }
  func.func @transform_4(%arg0: i32) -> (i32, i32) {
    %c0_i32 = arith.constant 0 : i32
    %c0_i32_0 = arith.constant 0 : i32
    %c0_i32_1 = arith.constant 0 : i32
    return %c0_i32, %c0_i32_0 : i32, i32
  }
  func.func @transform_5(%arg0: i32) -> (i32, i32) {
    %c0_i32 = arith.constant 0 : i32
    %c0_i32_0 = arith.constant 0 : i32
    %c0_i32_1 = arith.constant 0 : i32
    return %c0_i32, %c0_i32_0 : i32, i32
  }
  func.func @transform_6(%arg0: i32) -> (i32, i32) {
    %c0_i32 = arith.constant 0 : i32
    %c0_i32_0 = arith.constant 0 : i32
    %c0_i32_1 = arith.constant 0 : i32
    return %c0_i32, %c0_i32_0 : i32, i32
  }
  func.func @transform_7(%arg0: i32) -> (i32, i32) {
    %c0_i32 = arith.constant 0 : i32
    %c0_i32_0 = arith.constant 0 : i32
    return %arg0, %c0_i32 : i32, i32
  }
}

</mosaic_0001>

<bundles_post_ra>
// kernel: tpu_custom_call.1
= control target key start
LH: loop header
LB: loop body
LE: loop exit
PB: predicated region body
PF: predicated region fallthrough
CT: control target
= control target key end

     0   :  { %12 = vsyncpa [#allocation3], 0  ;;  %s1609_s0 = inlined_call_operand.hbm [shape: bf16[8,128], index: 0, kind: input, shape index: {}]   ;;  %s1610_s1 = inlined_call_operand.hbm [shape: bf16[128,512], index: 1, kind: input, shape index: {}]   ;;  %s1611_s2 = inlined_call_operand.hbm [shape: f32[1,512], index: 2, kind: input, shape index: {}]   ;;  %s1612_s3 = inlined_call_operand.hbm [shape: bf16[512,256], index: 3, kind: input, shape index: {}]   ;;  %s1613_s4 = inlined_call_operand.vmem [shape: f32[1,256], index: 4, kind: input, shape index: {}]   ;;  %s1614_s5 = inlined_call_operand.hbm [shape: bf16[256,128], index: 5, kind: input, shape index: {}]   ;;  %s1615_s6 = inlined_call_operand.vmem [shape: f32[1,128], index: 6, kind: input, shape index: {}]   ;;  %s1616_s7 = inlined_call_operand.hbm [shape: f32[8,128], index: 7, kind: output, shape index: {}]  }
   0x1   :  { %13 = vsyncpa [#allocation6], 0 }
   0x2   :  { %14 = vsyncpa [#allocation9], 0 }
   0x3   :  { %15 = vsyncpa [#allocation4], 0  ;;  %s1522_s24 = smov [#allocation5]  }
   0x4   :  { %s31_s25 = sshll.u32 %s1522_s24, 4  ;;  %s32_s25 = int_to_ptr.vmem [resolvable:$true] %s31_s25 }
   0x5   :  { %s1402_s26 = scalar_lea.vmem %s32_s25, 4096  ;;  %p1407_p1 = scmp.lt.s32.totalorder %s32_s25, %s32_s25 }
   0x6   :  { %p1403_p0 = scmp.ne.s32.totalorder %s32_s25, %s1402_s26  ;;  %p1408_p2 = scmp.lt.s32.totalorder %s1402_s26, %s1402_s26 }
   0x8   :  { %p1409_p3 = por %p1408_p2, %p1407_p1 }
   0xa   :  { %p1410_p4 = pnand %p1409_p3, %p1403_p0 }
   0xc   :  { %1413 = shalt.err (!%p1410_p4)
}
   0xd   :  { %s1523_s27 = smov 256   ;;  %s1524_s28 = smov 16  }
   0xe   :  { %37 = dma.hbm_to_vmem [thread:$0]  %s1610_s1, 4096, %s32_s25, [#allocation6], %s1523_s27, %s1523_s27, %s1524_s28  }
   0xf   :  { %s1525_s8 = smov [#allocation8]  }
  0x10   :  { %s53_s9 = sshll.u32 %s1525_s8, 4  ;;  %s54_s9 = int_to_ptr.vmem [resolvable:$true] %s53_s9 }
  0x11   :  { %s1422_s10 = scalar_lea.vmem %s54_s9, 8192  ;;  %p1427_p6 = scmp.lt.s32.totalorder %s54_s9, %s54_s9 }
  0x12   :  { %p1423_p5 = scmp.ne.s32.totalorder %s54_s9, %s1422_s10  ;;  %p1428_p7 = scmp.lt.s32.totalorder %s1422_s10, %s1422_s10 }
  0x14   :  { %p1429_p8 = por %p1428_p7, %p1427_p6 }
  0x16   :  { %p1430_p9 = pnand %p1429_p8, %p1423_p5 }
  0x18   :  { %1433 = shalt.err (!%p1430_p9)
}
  0x19   :  { %s1526_s11 = smov 128   ;;  %s1527_s12 = smov 8  }
  0x1a   :  { %59 = dma.hbm_to_vmem [thread:$0]  %s1612_s3, 8192, %s54_s9, [#allocation9], %s1526_s11, %s1526_s11, %s1527_s12  }
  0x1b   :  { %s1528_s15 = smov [#allocation2]   ;;  %s1529_s17 = smov [#allocation7]  }
  0x1c   :  { %s22_s16 = sshll.u32 %s1528_s15, 4  ;;  %s44_s1 = sshll.u32 %s1529_s17, 4  ;;  %s23_s16 = int_to_ptr.vmem [resolvable:$true] %s22_s16  ;;  %s45_s1 = int_to_ptr.vmem [resolvable:$true] %s44_s1 }
  0x1d   :  { %s1442_s18 = scalar_lea.vmem %s23_s16, 64  ;;  %p1447_p11 = scmp.lt.s32.totalorder %s23_s16, %s23_s16 }
  0x1e   :  { %p1443_p10 = scmp.ne.s32.totalorder %s23_s16, %s1442_s18  ;;  %p1448_p12 = scmp.lt.s32.totalorder %s1442_s18, %s1442_s18 }
  0x20   :  { %p1449_p13 = por %p1448_p12, %p1447_p11 }
  0x22   :  { %p1450_p0 = pnand %p1449_p13, %p1443_p10 }
  0x24   :  { %1453 = shalt.err (!%p1450_p0)
}
  0x25   :  { %25 = dma.hbm_to_vmem [thread:$0]  %s1609_s0, 64, %s23_s16, [#allocation3]  }
  0x26   :  { %s1462_s21 = scalar_lea.vmem %s45_s1, 64  ;;  %p1467_p2 = scmp.lt.s32.totalorder %s45_s1, %s45_s1 }
  0x27   :  { %p1463_p1 = scmp.ne.s32.totalorder %s45_s1, %s1462_s21  ;;  %p1468_p3 = scmp.lt.s32.totalorder %s1462_s21, %s1462_s21 }
  0x29   :  { %p1469_p4 = por %p1468_p3, %p1467_p2 }
  0x2b   :  { %p1470_p5 = pnand %p1469_p4, %p1463_p1 }
  0x2d   :  { %1473 = shalt.err (!%p1470_p5)
}
  0x2e   :  { %47 = dma.hbm_to_vmem [thread:$0]  %s1611_s2, 64, %s45_s1, [#allocation6]  }
  0x2f   :  { %s1530_s23 = smov [#allocation10]  }
  0x30   :  { %s67_s24 = sshll.u32 %s1530_s23, 4  ;;  %s68_s24 = int_to_ptr.vmem [resolvable:$true] %s67_s24 }
  0x31   :  { %s1482_s25 = scalar_lea.vmem %s68_s24, 2048  ;;  %p1487_p7 = scmp.lt.s32.totalorder %s68_s24, %s68_s24 }
  0x32   :  { %p1483_p6 = scmp.ne.s32.totalorder %s68_s24, %s1482_s25  ;;  %p1488_p8 = scmp.lt.s32.totalorder %s1482_s25, %s1482_s25 }
  0x34   :  { %p1489_p9 = por %p1488_p8, %p1487_p7 }
  0x36   :  { %p1490_p10 = pnand %p1489_p9, %p1483_p6 }
  0x38   :  { %1493 = shalt.err (!%p1490_p10)
}
  0x39   :  { %s1531_s0 = smov 64   ;;  %s1532_s26 = smov 4  }
  0x3a   :  { %73 = dma.hbm_to_vmem [thread:$0]  %s1614_s5, 2048, %s68_s24, [#allocation9], %s1531_s0, %s1531_s0, %s1532_s26  }
  0x3b   :  { %1514 = dma.done.wait [#allocation3], 64  }
  0x3c   :  { %1515 = vsyncadd [#allocation3], 4294967232 }
  0x3d   :  { %1516 = dma.done.wait [#allocation6], 4160  }
  0x3e   :  { %1517 = vsyncadd [#allocation6], 4294963136 }
  0x3f   :  { %1518 = dma.done.wait [#allocation9], 10240  }
  0x40   :  { %1519 = vsyncadd [#allocation9], 4294957056  ;;  %v1533_v0 = vmov 0   ;;  %v1230_v1 = vld [vmem:[#allocation5 + $0xe4] ss:$16 sps:$4 sm:$0xff]   ;;  %s1534_s30 = smov [#allocation11]  }
  0x41   :  { %339 = vmatprep.mubr.bf16.mxu0 %v1533_v0  ;;  %380 = vmatprep.mubr.bf16.mxu1 %v1533_v0  ;;  %v1232_v2 = vld [vmem:[#allocation5 + $0xec] ss:$16 sps:$4 sm:$0xff]   ;;  %v1234_v3 = vld [vmem:[#allocation5 + $0xe0] ss:$16 sps:$4 sm:$0xff]   ;;  %v1235_v4 = vld [vmem:[#allocation5 + $0xe8] ss:$16 sps:$4 sm:$0xff]  }
  0x42   :  { %307 = vmatprep.subr.bf16.mxu0 %v1230_v1  ;;  %348 = vmatprep.subr.bf16.mxu1 %v1232_v2  ;;  %v1236_v5 = vld [vmem:[#allocation5 + $0xc4] ss:$16 sps:$4 sm:$0xff]   ;;  %v1238_v6 = vld [vmem:[#allocation5 + $0xcc] ss:$16 sps:$4 sm:$0xff]   ;;  %v1240_v7 = vld [vmem:[#allocation5 + $0xc0] ss:$16 sps:$4 sm:$0xff]  }
  0x43   :  { %308 = vmatpush1.bf16.msra.mxu0 %v1234_v3  ;;  %349 = vmatpush1.bf16.msra.mxu1 %v1235_v4  ;;  %v1241_v8 = vld [vmem:[#allocation5 + $0xc8] ss:$16 sps:$4 sm:$0xff]   ;;  %v1242_v9 = vld [vmem:[#allocation5 + $0xa4] ss:$16 sps:$4 sm:$0xff]   ;;  %v1244_v10 = vld [vmem:[#allocation5 + $0xac] ss:$16 sps:$4 sm:$0xff]  }
  0x44   :  { %309 = vmatprep.subr.bf16.mxu0 %v1236_v5  ;;  %350 = vmatprep.subr.bf16.mxu1 %v1238_v6  ;;  %v1246_v11 = vld [vmem:[#allocation5 + $0xa0] ss:$16 sps:$4 sm:$0xff]   ;;  %v1247_v12 = vld [vmem:[#allocation5 + $0xa8] ss:$16 sps:$4 sm:$0xff]   ;;  %v1248_v13 = vld [vmem:[#allocation5 + $0x84] ss:$16 sps:$4 sm:$0xff]  }
  0x45   :  { %v1250_v14 = vld [vmem:[#allocation5 + $0x8c] ss:$16 sps:$4 sm:$0xff]   ;;  %v1252_v15 = vld [vmem:[#allocation5 + $0x80] ss:$16 sps:$4 sm:$0xff]   ;;  %v1253_v16 = vld [vmem:[#allocation5 + $0x88] ss:$16 sps:$4 sm:$0xff]  }
  0x46   :  { %v1254_v17 = vld [vmem:[#allocation5 + $0x64] ss:$16 sps:$4 sm:$0xff]   ;;  %v1256_v18 = vld [vmem:[#allocation5 + $0x6c] ss:$16 sps:$4 sm:$0xff]   ;;  %v1258_v19 = vld [vmem:[#allocation5 + $0x60] ss:$16 sps:$4 sm:$0xff]  }
  0x47   :  { %310 = vmatpush1.bf16.msra.mxu0 %v1240_v7  ;;  %351 = vmatpush1.bf16.msra.mxu1 %v1241_v8  ;;  %v1259_v20 = vld [vmem:[#allocation5 + $0x68] ss:$16 sps:$4 sm:$0xff]   ;;  %v1260_v21 = vld [vmem:[#allocation5 + $0x44] ss:$16 sps:$4 sm:$0xff]   ;;  %v1262_v22 = vld [vmem:[#allocation5 + $0x4c] ss:$16 sps:$4 sm:$0xff]  }
  0x48   :  { %311 = vmatprep.subr.bf16.mxu0 %v1242_v9  ;;  %352 = vmatprep.subr.bf16.mxu1 %v1244_v10  ;;  %v1264_v23 = vld [vmem:[#allocation5 + $0x40] ss:$16 sps:$4 sm:$0xff]   ;;  %v1265_v24 = vld [vmem:[#allocation5 + $0x48] ss:$16 sps:$4 sm:$0xff]   ;;  %v1266_v25 = vld [vmem:[#allocation5 + $0x24] ss:$16 sps:$4 sm:$0xff]  }
  0x49   :  { %v1268_v26 = vld [vmem:[#allocation5 + $0x2c] ss:$16 sps:$4 sm:$0xff]   ;;  %v1270_v27 = vld [vmem:[#allocation5 + $0x20] ss:$16 sps:$4 sm:$0xff]   ;;  %v1271_v28 = vld [vmem:[#allocation5 + $0x28] ss:$16 sps:$4 sm:$0xff]  }
  0x4a   :  { %v1272_v29 = vld [vmem:[#allocation5 + $0x4] ss:$16 sps:$4 sm:$0xff]   ;;  %v1274_v30 = vld [vmem:[#allocation5 + $0xc] ss:$16 sps:$4 sm:$0xff]   ;;  %v1276_v31 = vld [vmem:[#allocation5] ss:$16 sps:$4 sm:$0xff]  }
  0x4b   :  { %312 = vmatpush1.bf16.msra.mxu0 %v1246_v11  ;;  %353 = vmatpush1.bf16.msra.mxu1 %v1247_v12  ;;  %v1277_v32 = vld [vmem:[#allocation5 + $0x8] ss:$16 sps:$4 sm:$0xff]   ;;  %v92_v35 = vld [vmem:[#allocation2] sm:$0xf]  ;;  %v1284_v40 = vld [vmem:[#allocation8 + $0x60] ss:$8 sps:$4 sm:$0xff]  }
  0x4c   :  { %313 = vmatprep.subr.bf16.mxu0 %v1248_v13  ;;  %354 = vmatprep.subr.bf16.mxu1 %v1250_v14  ;;  %v1280_v33 = vld [vmem:[#allocation8 + $0x74] ss:$8 sps:$4 sm:$0xff]   ;;  %v1278_v36 = vld [vmem:[#allocation8 + $0x70] ss:$8 sps:$4 sm:$0xff]   ;;  %v1286_v38 = vld [vmem:[#allocation8 + $0x64] ss:$8 sps:$4 sm:$0xff]  }
  0x4d   :  { %v1283_v34 = vld [vmem:[#allocation8 + $0x174] ss:$8 sps:$4 sm:$0xff]   ;;  %v1281_v37 = vld [vmem:[#allocation8 + $0x170] ss:$8 sps:$4 sm:$0xff]   ;;  %v1289_v39 = vld [vmem:[#allocation8 + $0x164] ss:$8 sps:$4 sm:$0xff]  }
  0x4e   :  { %v1287_v41 = vld [vmem:[#allocation8 + $0x160] ss:$8 sps:$4 sm:$0xff]   ;;  %v1292_v42 = vld [vmem:[#allocation8 + $0x54] ss:$8 sps:$4 sm:$0xff]   ;;  %v1290_v44 = vld [vmem:[#allocation8 + $0x50] ss:$8 sps:$4 sm:$0xff]  }
  0x4f   :  { %314 = vmatpush1.bf16.msra.mxu0 %v1252_v15  ;;  %355 = vmatpush1.bf16.msra.mxu1 %v1253_v16  ;;  %v1295_v43 = vld [vmem:[#allocation8 + $0x154] ss:$8 sps:$4 sm:$0xff]   ;;  %v1293_v45 = vld [vmem:[#allocation8 + $0x150] ss:$8 sps:$4 sm:$0xff]   ;;  %v1298_v46 = vld [vmem:[#allocation8 + $0x44] ss:$8 sps:$4 sm:$0xff]  }
  0x50   :  { %315 = vmatprep.subr.bf16.mxu0 %v1254_v17  ;;  %356 = vmatprep.subr.bf16.mxu1 %v1256_v18  ;;  %v1301_v47 = vld [vmem:[#allocation8 + $0x144] ss:$8 sps:$4 sm:$0xff]   ;;  %v1296_v48 = vld [vmem:[#allocation8 + $0x40] ss:$8 sps:$4 sm:$0xff]   ;;  %v1304_v50 = vld [vmem:[#allocation8 + $0x34] ss:$8 sps:$4 sm:$0xff]  }
  0x51   :  { %v1299_v49 = vld [vmem:[#allocation8 + $0x140] ss:$8 sps:$4 sm:$0xff]   ;;  %v1307_v51 = vld [vmem:[#allocation8 + $0x134] ss:$8 sps:$4 sm:$0xff]   ;;  %v1302_v52 = vld [vmem:[#allocation8 + $0x30] ss:$8 sps:$4 sm:$0xff]  }
  0x52   :  { %v1305_v53 = vld [vmem:[#allocation8 + $0x130] ss:$8 sps:$4 sm:$0xff]   ;;  %v1310_v54 = vld [vmem:[#allocation8 + $0x24] ss:$8 sps:$4 sm:$0xff]   ;;  %v1308_v56 = vld [vmem:[#allocation8 + $0x20] ss:$8 sps:$4 sm:$0xff]  }
  0x53   :  { %316 = vmatpush1.bf16.msra.mxu0 %v1258_v19  ;;  %357 = vmatpush1.bf16.msra.mxu1 %v1259_v20  ;;  %v1313_v55 = vld [vmem:[#allocation8 + $0x124] ss:$8 sps:$4 sm:$0xff]   ;;  %v1311_v57 = vld [vmem:[#allocation8 + $0x120] ss:$8 sps:$4 sm:$0xff]   ;;  %v1316_v58 = vld [vmem:[#allocation8 + $0x14] ss:$8 sps:$4 sm:$0xff]  }
  0x54   :  { %317 = vmatprep.subr.bf16.mxu0 %v1260_v21  ;;  %358 = vmatprep.subr.bf16.mxu1 %v1262_v22  ;;  %v1319_v59 = vld [vmem:[#allocation8 + $0x114] ss:$8 sps:$4 sm:$0xff]   ;;  %v1314_v60 = vld [vmem:[#allocation8 + $0x10] ss:$8 sps:$4 sm:$0xff]   ;;  %v1322_v62 = vld [vmem:[#allocation8 + $0x4] ss:$8 sps:$4 sm:$0xff]  }
  0x55   :  { %v1317_v61 = vld [vmem:[#allocation8 + $0x110] ss:$8 sps:$4 sm:$0xff]   ;;  %v1325_v63 = vld [vmem:[#allocation8 + $0x104] ss:$8 sps:$4 sm:$0xff]   ;;  %v1320_v0 = vld [vmem:[#allocation8] ss:$8 sps:$4 sm:$0xff]  }
  0x56   :  { %v1323_v1 = vld [vmem:[#allocation8 + $0x100] ss:$8 sps:$4 sm:$0xff]   ;;  %v1328_v2 = vld [vmem:[#allocation8 + $0xf4] ss:$8 sps:$4 sm:$0xff]   ;;  %v1326_v4 = vld [vmem:[#allocation8 + $0xf0] ss:$8 sps:$4 sm:$0xff]  }
  0x57   :  { %318 = vmatpush1.bf16.msra.mxu0 %v1264_v23  ;;  %359 = vmatpush1.bf16.msra.mxu1 %v1265_v24  ;;  %v1331_v3 = vld [vmem:[#allocation8 + $0x1f4] ss:$8 sps:$4 sm:$0xff]   ;;  %v1329_v5 = vld [vmem:[#allocation8 + $0x1f0] ss:$8 sps:$4 sm:$0xff]   ;;  %v1334_v6 = vld [vmem:[#allocation8 + $0xe4] ss:$8 sps:$4 sm:$0xff]  }
  0x58   :  { %319 = vmatprep.subr.bf16.mxu0 %v1266_v25  ;;  %360 = vmatprep.subr.bf16.mxu1 %v1268_v26  ;;  %v1337_v7 = vld [vmem:[#allocation8 + $0x1e4] ss:$8 sps:$4 sm:$0xff]   ;;  %v1332_v8 = vld [vmem:[#allocation8 + $0xe0] ss:$8 sps:$4 sm:$0xff]   ;;  %v1340_v10 = vld [vmem:[#allocation8 + $0xd4] ss:$8 sps:$4 sm:$0xff]  }
  0x59   :  { %v1335_v9 = vld [vmem:[#allocation8 + $0x1e0] ss:$8 sps:$4 sm:$0xff]   ;;  %v1343_v11 = vld [vmem:[#allocation8 + $0x1d4] ss:$8 sps:$4 sm:$0xff]   ;;  %v1338_v12 = vld [vmem:[#allocation8 + $0xd0] ss:$8 sps:$4 sm:$0xff]  }
  0x5a   :  { %v1341_v13 = vld [vmem:[#allocation8 + $0x1d0] ss:$8 sps:$4 sm:$0xff]   ;;  %v1346_v14 = vld [vmem:[#allocation8 + $0xc4] ss:$8 sps:$4 sm:$0xff]   ;;  %v1344_v16 = vld [vmem:[#allocation8 + $0xc0] ss:$8 sps:$4 sm:$0xff]  }
  0x5b   :  { %320 = vmatpush1.bf16.msra.mxu0 %v1270_v27  ;;  %361 = vmatpush1.bf16.msra.mxu1 %v1271_v28  ;;  %v1349_v15 = vld [vmem:[#allocation8 + $0x1c4] ss:$8 sps:$4 sm:$0xff]   ;;  %v1347_v17 = vld [vmem:[#allocation8 + $0x1c0] ss:$8 sps:$4 sm:$0xff]   ;;  %v1352_v18 = vld [vmem:[#allocation8 + $0xb4] ss:$8 sps:$4 sm:$0xff]  }
  0x5c   :  { %321 = vmatprep.subr.bf16.mxu0 %v1272_v29  ;;  %362 = vmatprep.subr.bf16.mxu1 %v1274_v30  ;;  %v1355_v19 = vld [vmem:[#allocation8 + $0x1b4] ss:$8 sps:$4 sm:$0xff]   ;;  %v1350_v20 = vld [vmem:[#allocation8 + $0xb0] ss:$8 sps:$4 sm:$0xff]   ;;  %v1358_v22 = vld [vmem:[#allocation8 + $0xa4] ss:$8 sps:$4 sm:$0xff]  }
  0x5d   :  { %v1353_v21 = vld [vmem:[#allocation8 + $0x1b0] ss:$8 sps:$4 sm:$0xff]   ;;  %v1361_v23 = vld [vmem:[#allocation8 + $0x1a4] ss:$8 sps:$4 sm:$0xff]   ;;  %v1356_v24 = vld [vmem:[#allocation8 + $0xa0] ss:$8 sps:$4 sm:$0xff]  }
  0x5e   :  { %v1359_v25 = vld [vmem:[#allocation8 + $0x1a0] ss:$8 sps:$4 sm:$0xff]   ;;  %v1364_v26 = vld [vmem:[#allocation8 + $0x94] ss:$8 sps:$4 sm:$0xff]   ;;  %v1362_v28 = vld [vmem:[#allocation8 + $0x90] ss:$8 sps:$4 sm:$0xff]  }
  0x5f   :  { %322 = vmatpush1.bf16.msra.mxu0 %v1276_v31  ;;  %363 = vmatpush1.bf16.msra.mxu1 %v1277_v32  ;;  %v1367_v27 = vld [vmem:[#allocation8 + $0x194] ss:$8 sps:$4 sm:$0xff]   ;;  %v1365_v29 = vld [vmem:[#allocation8 + $0x190] ss:$8 sps:$4 sm:$0xff]   ;;  %v1370_v30 = vld [vmem:[#allocation8 + $0x84] ss:$8 sps:$4 sm:$0xff]  }
  0x60   :  { %793 = vmatprep.subr.bf16.mxu0 %v1280_v33  ;;  %834 = vmatprep.subr.bf16.mxu1 %v1283_v34  ;;  %v1373_v31 = vld [vmem:[#allocation8 + $0x184] ss:$8 sps:$4 sm:$0xff]   ;;  %v1368_v32 = vld [vmem:[#allocation8 + $0x80] ss:$8 sps:$4 sm:$0xff]   ;;  %v1374_v34 = vld [vmem:[#allocation10 + $0x78] sm:$0xff]   ;;  %s1071_s8 = sshll.u32 %s1534_s30, 4  ;;  %s1072_s8 = int_to_ptr.vmem [resolvable:$true] %s1071_s8 }
  0x61   :  { %v1371_v33 = vld [vmem:[#allocation8 + $0x180] ss:$8 sps:$4 sm:$0xff]   ;;  %p1499_p12 = scmp.lt.s32.totalorder %s1072_s8, %s1072_s8 }
  0x62   :  { %340 = vmatmul.mubr.bf16.vlgmr.msra.gmra.mxu0 %v92_v35  ;;  %381 = vmatmul.mubr.bf16.vlgmr.msra.gmra.mxu1 %v92_v35  ;;  %v127_v35 = vlaneseq }
  0x63   :  { %794 = vmatpush1.bf16.msra.mxu0 %v1278_v36  ;;  %835 = vmatpush1.bf16.msra.mxu1 %v1281_v37 }
  0x64   :  { %795 = vmatprep.subr.bf16.mxu0 %v1286_v38  ;;  %836 = vmatprep.subr.bf16.mxu1 %v1289_v39  ;;  %v1590_v36 = vshrl.u32 %v127_v35, 7  ;;  %v125_v39 = vld [vmem:[#allocation7] sm:$0xf] }
  0x66   :  { %v129_v37 = vsub.s32 0, %v1590_v36  ;;  %v137_v38 = vsub.s32 2, %v1590_v36 }
  0x67   :  { %796 = vmatpush1.bf16.msra.mxu0 %v1284_v40  ;;  %837 = vmatpush1.bf16.msra.mxu1 %v1287_v41  ;;  %v133_v40 = vsub.s32 1, %v1590_v36  ;;  %v141_v41 = vsub.s32 3, %v1590_v36 }
  0x68   :  { %797 = vmatprep.subr.bf16.mxu0 %v1292_v42  ;;  %838 = vmatprep.subr.bf16.mxu1 %v1295_v43  ;;  %v130_v42 = vrot.slane %v125_v39, %v129_v37  ;;  %v138_v43 = vrot.slane %v125_v39, %v137_v38  ;;  %v1178_v38 = vld [vmem:[%s1615_s6] ss:$0 sm:$0xff]  ;;  %s1494_s6 = scalar_lea.vmem %s1072_s8, 128 }
  0x69   :  { %p1495_p11 = scmp.ne.s32.totalorder %s1072_s8, %s1494_s6  ;;  %p1500_p13 = scmp.lt.s32.totalorder %s1494_s6, %s1494_s6 }
  0x6b   :  { %798 = vmatpush1.bf16.msra.mxu0 %v1290_v44  ;;  %839 = vmatpush1.bf16.msra.mxu1 %v1293_v45  ;;  %v134_v44 = vrot.slane %v125_v39, %v133_v40  ;;  %v142_v45 = vrot.slane %v125_v39, %v141_v41  ;;  %p1501_p0 = por %p1500_p13, %p1499_p12 }
  0x6c   :  { %799 = vmatprep.subr.bf16.mxu0 %v1298_v46  ;;  %840 = vmatprep.subr.bf16.mxu1 %v1301_v47 }
  0x6d   :  { %p1502_p1 = pnand %p1501_p0, %p1495_p11 }
  0x6f   :  { %800 = vmatpush1.bf16.msra.mxu0 %v1296_v48  ;;  %841 = vmatpush1.bf16.msra.mxu1 %v1299_v49 }
  0x70   :  { %801 = vmatprep.subr.bf16.mxu0 %v1304_v50  ;;  %842 = vmatprep.subr.bf16.mxu1 %v1307_v51 }
  0x73   :  { %802 = vmatpush1.bf16.msra.mxu0 %v1302_v52  ;;  %843 = vmatpush1.bf16.msra.mxu1 %v1305_v53 }
  0x74   :  { %803 = vmatprep.subr.bf16.mxu0 %v1310_v54  ;;  %844 = vmatprep.subr.bf16.mxu1 %v1313_v55 }
  0x77   :  { %804 = vmatpush1.bf16.msra.mxu0 %v1308_v56  ;;  %845 = vmatpush1.bf16.msra.mxu1 %v1311_v57 }
  0x78   :  { %805 = vmatprep.subr.bf16.mxu0 %v1316_v58  ;;  %846 = vmatprep.subr.bf16.mxu1 %v1319_v59 }
  0x7b   :  { %806 = vmatpush1.bf16.msra.mxu0 %v1314_v60  ;;  %847 = vmatpush1.bf16.msra.mxu1 %v1317_v61 }
  0x7c   :  { %807 = vmatprep.subr.bf16.mxu0 %v1322_v62  ;;  %848 = vmatprep.subr.bf16.mxu1 %v1325_v63 }
  0x7f   :  { %808 = vmatpush1.bf16.msra.mxu0 %v1320_v0  ;;  %849 = vmatpush1.bf16.msra.mxu1 %v1323_v1  ;;  %v1375_v1 = vld [vmem:[#allocation10 + $0x38] sm:$0xff]  }
  0x80   :  { %809 = vmatprep.subr.bf16.mxu0 %v1328_v2  ;;  %850 = vmatprep.subr.bf16.mxu1 %v1331_v3  ;;  %v1376_v3 = vld [vmem:[#allocation10 + $0x70] sm:$0xff]  }
  0x83   :  { %810 = vmatpush2.bf16.msra.mxu0 %v1326_v4  ;;  %851 = vmatpush2.bf16.msra.mxu1 %v1329_v5  ;;  %v1377_v4 = vld [vmem:[#allocation10 + $0x30] sm:$0xff]   ;;  %v1378_v5 = vld [vmem:[#allocation10 + $0x68] sm:$0xff]  }
  0x84   :  { %811 = vmatprep.subr.bf16.mxu0 %v1334_v6  ;;  %852 = vmatprep.subr.bf16.mxu1 %v1337_v7  ;;  %v1379_v6 = vld [vmem:[#allocation10 + $0x28] sm:$0xff]   ;;  %v1380_v7 = vld [vmem:[#allocation10 + $0x60] sm:$0xff]  }
  0x87   :  { %812 = vmatpush2.bf16.msra.mxu0 %v1332_v8  ;;  %853 = vmatpush2.bf16.msra.mxu1 %v1335_v9  ;;  %v1381_v8 = vld [vmem:[#allocation10 + $0x20] sm:$0xff]   ;;  %v1382_v9 = vld [vmem:[#allocation10 + $0x58] sm:$0xff]  }
  0x88   :  { %813 = vmatprep.subr.bf16.mxu0 %v1340_v10  ;;  %854 = vmatprep.subr.bf16.mxu1 %v1343_v11  ;;  %v1383_v10 = vld [vmem:[#allocation10 + $0x18] sm:$0xff]   ;;  %v1384_v11 = vld [vmem:[#allocation10 + $0x50] sm:$0xff]  }
  0x8b   :  { %814 = vmatpush2.bf16.msra.mxu0 %v1338_v12  ;;  %855 = vmatpush2.bf16.msra.mxu1 %v1341_v13  ;;  %v1385_v12 = vld [vmem:[#allocation10 + $0x10] sm:$0xff]   ;;  %v1386_v13 = vld [vmem:[#allocation10 + $0x48] sm:$0xff]  }
  0x8c   :  { %815 = vmatprep.subr.bf16.mxu0 %v1346_v14  ;;  %856 = vmatprep.subr.bf16.mxu1 %v1349_v15  ;;  %v1387_v14 = vld [vmem:[#allocation10 + $0x8] sm:$0xff]   ;;  %v1388_v15 = vld [vmem:[#allocation10 + $0x40] sm:$0xff]  }
  0x8f   :  { %816 = vmatpush2.bf16.msra.mxu0 %v1344_v16  ;;  %857 = vmatpush2.bf16.msra.mxu1 %v1347_v17  ;;  %v1389_v16 = vld [vmem:[#allocation10] sm:$0xff]   ;;  %v461_v17 = vld [vmem:[%s1613_s4] sm:$0x3] }
  0x90   :  { %817 = vmatprep.subr.bf16.mxu0 %v1352_v18  ;;  %858 = vmatprep.subr.bf16.mxu1 %v1355_v19  ;;  %v466_v18 = vrot.slane %v461_v17, %v129_v37  ;;  %v470_v19 = vrot.slane %v461_v17, %v133_v40 }
  0x93   :  { %818 = vmatpush2.bf16.msra.mxu0 %v1350_v20  ;;  %859 = vmatpush2.bf16.msra.mxu1 %v1353_v21 }
  0x94   :  { %819 = vmatprep.subr.bf16.mxu0 %v1358_v22  ;;  %860 = vmatprep.subr.bf16.mxu1 %v1361_v23 }
  0x97   :  { %820 = vmatpush2.bf16.msra.mxu0 %v1356_v24  ;;  %861 = vmatpush2.bf16.msra.mxu1 %v1359_v25 }
  0x98   :  { %821 = vmatprep.subr.bf16.mxu0 %v1364_v26  ;;  %862 = vmatprep.subr.bf16.mxu1 %v1367_v27 }
  0x9b   :  { %822 = vmatpush2.bf16.msra.mxu0 %v1362_v28  ;;  %863 = vmatpush2.bf16.msra.mxu1 %v1365_v29 }
  0x9c   :  { %823 = vmatprep.subr.bf16.mxu0 %v1370_v30  ;;  %864 = vmatprep.subr.bf16.mxu1 %v1373_v31 }
  0x9f   :  { %824 = vmatpush2.bf16.msra.mxu0 %v1368_v32  ;;  %865 = vmatpush2.bf16.msra.mxu1 %v1371_v33 }
  0xa0   :  { %1195 = vmatprep.subr.bf16.mxu0 %v1374_v34 }
 0x122   :  { %v341_v46 = vpop.f32.mrf.mxu0  ;;  %v382_v47 = vpop.f32.mrf.mxu1 }
 0x123   :  { %v342_v48 = vadd.f32 %v341_v46, %v130_v42  ;;  %v383_v49 = vadd.f32 %v382_v47, %v138_v43 }
 0x124   :  { %v343_v50 = vpop.f32.mrf.mxu0  ;;  %v384_v51 = vpop.f32.mrf.mxu1 }
 0x125   :  { %v391_v52 = vmax.f32 %v383_v49, 0.0  ;;  %v344_v53 = vadd.f32 %v343_v50, %v134_v44  ;;  %v385_v54 = vadd.f32 %v384_v51, %v142_v45  ;;  %v389_v55 = vmax.f32 %v342_v48, 0.0 }
 0x126   :  { %v345_v56 = vpop.f32.mrf.mxu0  ;;  %v386_v57 = vpop.f32.mrf.mxu1 }
 0x127   :  { %v390_v58 = vmax.f32 %v344_v53, 0.0  ;;  %v392_v59 = vmax.f32 %v385_v54, 0.0  ;;  %v395_v60 = vpack.c.bf16 %v391_v52, %v391_v52  ;;  %v393_v2 = vpack.c.bf16 %v389_v55, %v389_v55 }
 0x128   :  { %v346_v61 = vpop.f32.mrf.mxu0  ;;  %v387_v62 = vpop.f32.mrf.mxu1 }
 0x129   :  { %v394_v63 = vpack.c.bf16 %v390_v58, %v390_v58  ;;  %v396_v0 = vpack.c.bf16 %v392_v59, %v392_v59 }
 0x12b   :  { %825 = vmatprep.mubr.bf16.mxu0 %v394_v63  ;;  %866 = vmatprep.mubr.bf16.mxu1 %v396_v0 }
 0x12c   :  { %826 = vmatmul.mubr.bf16.vlgmr.msra.gmra.mxu0 %v393_v2  ;;  %867 = vmatmul.mubr.bf16.vlgmr.msra.gmra.mxu1 %v395_v60 }
 0x12d   :  { %1196 = vmatpush3.bf16.msra.mxu0 %v1375_v1 }
 0x12e   :  { %1197 = vmatprep.subr.bf16.mxu0 %v1376_v3 }
 0x131   :  { %1198 = vmatpush3.bf16.msra.mxu0 %v1377_v4 }
 0x132   :  { %1199 = vmatprep.subr.bf16.mxu0 %v1378_v5 }
 0x135   :  { %1200 = vmatpush3.bf16.msra.mxu0 %v1379_v6 }
 0x136   :  { %1201 = vmatprep.subr.bf16.mxu0 %v1380_v7 }
 0x139   :  { %1202 = vmatpush3.bf16.msra.mxu0 %v1381_v8 }
 0x13a   :  { %1203 = vmatprep.subr.bf16.mxu0 %v1382_v9 }
 0x13d   :  { %1204 = vmatpush3.bf16.msra.mxu0 %v1383_v10 }
 0x13e   :  { %1205 = vmatprep.subr.bf16.mxu0 %v1384_v11 }
 0x141   :  { %1206 = vmatpush3.bf16.msra.mxu0 %v1385_v12 }
 0x142   :  { %1207 = vmatprep.subr.bf16.mxu0 %v1386_v13 }
 0x145   :  { %1208 = vmatpush3.bf16.msra.mxu0 %v1387_v14 }
 0x146   :  { %1209 = vmatprep.subr.bf16.mxu0 %v1388_v15 }
 0x149   :  { %1210 = vmatpush3.bf16.msra.mxu0 %v1389_v16 }
 0x1ec   :  { %v827_v20 = vpop.f32.mrf.mxu0  ;;  %v868_v21 = vpop.f32.mrf.mxu1 }
 0x1ed   :  { %v828_v22 = vadd.f32 %v827_v20, %v466_v18 }
 0x1ee   :  { %v829_v23 = vpop.f32.mrf.mxu0  ;;  %v870_v24 = vpop.f32.mrf.mxu1 }
 0x1ef   :  { %v869_v25 = vadd.f32 %v868_v21, %v828_v22  ;;  %v830_v26 = vadd.f32 %v829_v23, %v470_v19 }
 0x1f0   :  { %v831_v27 = vpop.f32.mrf.mxu0  ;;  %v872_v28 = vpop.f32.mrf.mxu1 }
 0x1f1   :  { %v871_v29 = vadd.f32 %v870_v24, %v830_v26  ;;  %v875_v30 = vmax.f32 %v869_v25, 0.0 }
 0x1f2   :  { %v832_v31 = vpop.f32.mrf.mxu0  ;;  %v873_v32 = vpop.f32.mrf.mxu1 }
 0x1f3   :  { %v876_v33 = vmax.f32 %v871_v29, 0.0  ;;  %v877_v35 = vpack.c.bf16 %v875_v30, %v875_v30 }
 0x1f5   :  { %v878_v34 = vpack.c.bf16 %v876_v33, %v876_v33 }
 0x1f7   :  { %1046 = vmatprep.mubr.bf16.mxu0 %v878_v34 }
 0x1f8   :  { %1047 = vmatmul.mubr.bf16.vlgmr.msra.gmra.mxu0 %v877_v35 }
 0x2b8   :  { %v1211_v36 = vpop.f32.mrf.mxu0 }
 0x2ba   :  { %v1212_v37 = vpop.f32.mrf.mxu0 }
 0x2bb   :  { %v1213_v39 = vadd.f32 %v1212_v37, %v1211_v36 }
 0x2bc   :  { %v1214_v40 = vpop.f32.mrf.mxu0 }
 0x2bd   :  { %v1049_v41 = vadd.f32 %v1213_v39, %v1178_v38 }
 0x2be   :  { %v1215_v42 = vpop.f32.mrf.mxu0 }
 0x2bf   :  { %1054 = vmax.xlane.f32.xlu0 %v1049_v41 }
 0x348   :  { %v1055_v43 = vpop.xlane.xlu0 %1054 }
 0x349   :  { %v1056_v44 = vsub.f32 %v1049_v41, %v1055_v43 }
 0x34b   :  { %v1057_v45 = vmul.f32 1.442695, %v1056_v44 }
 0x34d   :  { %1390 = vpow2.f32 %v1057_v45 }
 0x35a   :  { %v1391_v46 = vpop.eup %1390 }
 0x35b   :  { %1059 = vadd.xlane.f32.xlu0 %v1391_v46 }
 0x3e4   :  { %v1060_v47 = vpop.xlane.xlu0 %1059 }
 0x3e5   :  { %1392 = vlog2.f32 %v1060_v47 }
 0x3f2   :  { %v1393_v48 = vpop.eup %1392 }
 0x3f3   :  { %v1062_v49 = vmul.f32 0.6931472, %v1393_v48 }
 0x3f5   :  { %v1063_v50 = vsub.f32 %v1056_v44, %v1062_v49 }
 0x3f7   :  { %1064 = vst [vmem:[#allocation11] sm:$0xff] %v1063_v50 }
 0x3f8   :  { %1505 = shalt.err (!%p1502_p1)
}
 0x3f9   :  { %1074 = dma.vmem_to_hbm [thread:$0]  %s1072_s8, 128, %s1616_s7, [#allocation4]  }
 0x3fa   :  { %1520 = dma.done.wait [#allocation4], 128  }
 0x3fb   :  { %1521 = vsyncadd [#allocation4], 4294967168 }
 0x3fc   :  { %1078 = vsyncpa [#allocation3], 1 }
 0x3fd   :  { %1079 = vsyncpa [#allocation6], 1 }
 0x3fe   :  { %1080 = vsyncpa [#allocation9], 1 }
 0x3ff   :  { %1081 = vsyncpa [#allocation4], 1 }

// kernel: tpu_custom_call.1
= control target key start
LH: loop header
LB: loop body
LE: loop exit
PB: predicated region body
PF: predicated region fallthrough
CT: control target
= control target key end

     0   :  { %12 = vsyncpa [#allocation3], 0  ;;  %s1609_s0 = inlined_call_operand.hbm [shape: bf16[8,128], index: 0, kind: input, shape index: {}]   ;;  %s1610_s1 = inlined_call_operand.hbm [shape: bf16[128,512], index: 1, kind: input, shape index: {}]   ;;  %s1611_s2 = inlined_call_operand.hbm [shape: f32[1,512], index: 2, kind: input, shape index: {}]   ;;  %s1612_s3 = inlined_call_operand.hbm [shape: bf16[512,256], index: 3, kind: input, shape index: {}]   ;;  %s1613_s4 = inlined_call_operand.vmem [shape: f32[1,256], index: 4, kind: input, shape index: {}]   ;;  %s1614_s5 = inlined_call_operand.hbm [shape: bf16[256,128], index: 5, kind: input, shape index: {}]   ;;  %s1615_s6 = inlined_call_operand.vmem [shape: f32[1,128], index: 6, kind: input, shape index: {}]   ;;  %s1616_s7 = inlined_call_operand.hbm [shape: f32[8,128], index: 7, kind: output, shape index: {}]  }
   0x1   :  { %13 = vsyncpa [#allocation6], 0 }
   0x2   :  { %14 = vsyncpa [#allocation9], 0 }
   0x3   :  { %15 = vsyncpa [#allocation4], 0  ;;  %s1522_s24 = smov [#allocation5]  }
   0x4   :  { %s31_s25 = sshll.u32 %s1522_s24, 4  ;;  %s32_s25 = int_to_ptr.vmem [resolvable:$true] %s31_s25 }
   0x5   :  { %s1402_s26 = scalar_lea.vmem %s32_s25, 4096  ;;  %p1407_p1 = scmp.lt.s32.totalorder %s32_s25, %s32_s25 }
   0x6   :  { %p1403_p0 = scmp.ne.s32.totalorder %s32_s25, %s1402_s26  ;;  %p1408_p2 = scmp.lt.s32.totalorder %s1402_s26, %s1402_s26 }
   0x8   :  { %p1409_p3 = por %p1408_p2, %p1407_p1 }
   0xa   :  { %p1410_p4 = pnand %p1409_p3, %p1403_p0 }
   0xc   :  { %1413 = shalt.err (!%p1410_p4)
}
   0xd   :  { %s1523_s27 = smov 256   ;;  %s1524_s28 = smov 16  }
   0xe   :  { %37 = dma.hbm_to_vmem [thread:$0]  %s1610_s1, 4096, %s32_s25, [#allocation6], %s1523_s27, %s1523_s27, %s1524_s28  }
   0xf   :  { %s1525_s8 = smov [#allocation8]  }
  0x10   :  { %s53_s9 = sshll.u32 %s1525_s8, 4  ;;  %s54_s9 = int_to_ptr.vmem [resolvable:$true] %s53_s9 }
  0x11   :  { %s1422_s10 = scalar_lea.vmem %s54_s9, 8192  ;;  %p1427_p6 = scmp.lt.s32.totalorder %s54_s9, %s54_s9 }
  0x12   :  { %p1423_p5 = scmp.ne.s32.totalorder %s54_s9, %s1422_s10  ;;  %p1428_p7 = scmp.lt.s32.totalorder %s1422_s10, %s1422_s10 }
  0x14   :  { %p1429_p8 = por %p1428_p7, %p1427_p6 }
  0x16   :  { %p1430_p9 = pnand %p1429_p8, %p1423_p5 }
  0x18   :  { %1433 = shalt.err (!%p1430_p9)
}
  0x19   :  { %s1526_s11 = smov 128   ;;  %s1527_s12 = smov 8  }
  0x1a   :  { %59 = dma.hbm_to_vmem [thread:$0]  %s1612_s3, 8192, %s54_s9, [#allocation9], %s1526_s11, %s1526_s11, %s1527_s12  }
  0x1b   :  { %s1528_s15 = smov [#allocation2]   ;;  %s1529_s17 = smov [#allocation7]  }
  0x1c   :  { %s22_s16 = sshll.u32 %s1528_s15, 4  ;;  %s44_s1 = sshll.u32 %s1529_s17, 4  ;;  %s23_s16 = int_to_ptr.vmem [resolvable:$true] %s22_s16  ;;  %s45_s1 = int_to_ptr.vmem [resolvable:$true] %s44_s1 }
  0x1d   :  { %s1442_s18 = scalar_lea.vmem %s23_s16, 64  ;;  %p1447_p11 = scmp.lt.s32.totalorder %s23_s16, %s23_s16 }
  0x1e   :  { %p1443_p10 = scmp.ne.s32.totalorder %s23_s16, %s1442_s18  ;;  %p1448_p12 = scmp.lt.s32.totalorder %s1442_s18, %s1442_s18 }
  0x20   :  { %p1449_p13 = por %p1448_p12, %p1447_p11 }
  0x22   :  { %p1450_p0 = pnand %p1449_p13, %p1443_p10 }
  0x24   :  { %1453 = shalt.err (!%p1450_p0)
}
  0x25   :  { %25 = dma.hbm_to_vmem [thread:$0]  %s1609_s0, 64, %s23_s16, [#allocation3]  }
  0x26   :  { %s1462_s21 = scalar_lea.vmem %s45_s1, 64  ;;  %p1467_p2 = scmp.lt.s32.totalorder %s45_s1, %s45_s1 }
  0x27   :  { %p1463_p1 = scmp.ne.s32.totalorder %s45_s1, %s1462_s21  ;;  %p1468_p3 = scmp.lt.s32.totalorder %s1462_s21, %s1462_s21 }
  0x29   :  { %p1469_p4 = por %p1468_p3, %p1467_p2 }
  0x2b   :  { %p1470_p5 = pnand %p1469_p4, %p1463_p1 }
  0x2d   :  { %1473 = shalt.err (!%p1470_p5)
}
  0x2e   :  { %47 = dma.hbm_to_vmem [thread:$0]  %s1611_s2, 64, %s45_s1, [#allocation6]  }
  0x2f   :  { %s1530_s23 = smov [#allocation10]  }
  0x30   :  { %s67_s24 = sshll.u32 %s1530_s23, 4  ;;  %s68_s24 = int_to_ptr.vmem [resolvable:$true] %s67_s24 }
  0x31   :  { %s1482_s25 = scalar_lea.vmem %s68_s24, 2048  ;;  %p1487_p7 = scmp.lt.s32.totalorder %s68_s24, %s68_s24 }
  0x32   :  { %p1483_p6 = scmp.ne.s32.totalorder %s68_s24, %s1482_s25  ;;  %p1488_p8 = scmp.lt.s32.totalorder %s1482_s25, %s1482_s25 }
  0x34   :  { %p1489_p9 = por %p1488_p8, %p1487_p7 }
  0x36   :  { %p1490_p10 = pnand %p1489_p9, %p1483_p6 }
  0x38   :  { %1493 = shalt.err (!%p1490_p10)
}
  0x39   :  { %s1531_s0 = smov 64   ;;  %s1532_s26 = smov 4  }
  0x3a   :  { %73 = dma.hbm_to_vmem [thread:$0]  %s1614_s5, 2048, %s68_s24, [#allocation9], %s1531_s0, %s1531_s0, %s1532_s26  }
  0x3b   :  { %1514 = dma.done.wait [#allocation3], 64  }
  0x3c   :  { %1515 = vsyncadd [#allocation3], 4294967232 }
  0x3d   :  { %1516 = dma.done.wait [#allocation6], 4160  }
  0x3e   :  { %1517 = vsyncadd [#allocation6], 4294963136 }
  0x3f   :  { %1518 = dma.done.wait [#allocation9], 10240  }
  0x40   :  { %1519 = vsyncadd [#allocation9], 4294957056  ;;  %v1533_v0 = vmov 0   ;;  %v1230_v1 = vld [vmem:[#allocation5 + $0xe4] ss:$16 sps:$4 sm:$0xff]   ;;  %s1534_s30 = smov [#allocation11]  }
  0x41   :  { %339 = vmatprep.mubr.bf16.mxu0 %v1533_v0  ;;  %380 = vmatprep.mubr.bf16.mxu1 %v1533_v0  ;;  %v1232_v2 = vld [vmem:[#allocation5 + $0xec] ss:$16 sps:$4 sm:$0xff]   ;;  %v1234_v3 = vld [vmem:[#allocation5 + $0xe0] ss:$16 sps:$4 sm:$0xff]   ;;  %v1235_v4 = vld [vmem:[#allocation5 + $0xe8] ss:$16 sps:$4 sm:$0xff]  }
  0x42   :  { %307 = vmatprep.subr.bf16.mxu0 %v1230_v1  ;;  %348 = vmatprep.subr.bf16.mxu1 %v1232_v2  ;;  %v1236_v5 = vld [vmem:[#allocation5 + $0xc4] ss:$16 sps:$4 sm:$0xff]   ;;  %v1238_v6 = vld [vmem:[#allocation5 + $0xcc] ss:$16 sps:$4 sm:$0xff]   ;;  %v1240_v7 = vld [vmem:[#allocation5 + $0xc0] ss:$16 sps:$4 sm:$0xff]  }
  0x43   :  { %308 = vmatpush1.bf16.msra.mxu0 %v1234_v3  ;;  %349 = vmatpush1.bf16.msra.mxu1 %v1235_v4  ;;  %v1241_v8 = vld [vmem:[#allocation5 + $0xc8] ss:$16 sps:$4 sm:$0xff]   ;;  %v1242_v9 = vld [vmem:[#allocation5 + $0xa4] ss:$16 sps:$4 sm:$0xff]   ;;  %v1244_v10 = vld [vmem:[#allocation5 + $0xac] ss:$16 sps:$4 sm:$0xff]  }
  0x44   :  { %309 = vmatprep.subr.bf16.mxu0 %v1236_v5  ;;  %350 = vmatprep.subr.bf16.mxu1 %v1238_v6  ;;  %v1246_v11 = vld [vmem:[#allocation5 + $0xa0] ss:$16 sps:$4 sm:$0xff]   ;;  %v1247_v12 = vld [vmem:[#allocation5 + $0xa8] ss:$16 sps:$4 sm:$0xff]   ;;  %v1248_v13 = vld [vmem:[#allocation5 + $0x84] ss:$16 sps:$4 sm:$0xff]  }
  0x45   :  { %v1250_v14 = vld [vmem:[#allocation5 + $0x8c] ss:$16 sps:$4 sm:$0xff]   ;;  %v1252_v15 = vld [vmem:[#allocation5 + $0x80] ss:$16 sps:$4 sm:$0xff]   ;;  %v1253_v16 = vld [vmem:[#allocation5 + $0x88] ss:$16 sps:$4 sm:$0xff]  }
  0x46   :  { %v1254_v17 = vld [vmem:[#allocation5 + $0x64] ss:$16 sps:$4 sm:$0xff]   ;;  %v1256_v18 = vld [vmem:[#allocation5 + $0x6c] ss:$16 sps:$4 sm:$0xff]   ;;  %v1258_v19 = vld [vmem:[#allocation5 + $0x60] ss:$16 sps:$4 sm:$0xff]  }
  0x47   :  { %310 = vmatpush1.bf16.msra.mxu0 %v1240_v7  ;;  %351 = vmatpush1.bf16.msra.mxu1 %v1241_v8  ;;  %v1259_v20 = vld [vmem:[#allocation5 + $0x68] ss:$16 sps:$4 sm:$0xff]   ;;  %v1260_v21 = vld [vmem:[#allocation5 + $0x44] ss:$16 sps:$4 sm:$0xff]   ;;  %v1262_v22 = vld [vmem:[#allocation5 + $0x4c] ss:$16 sps:$4 sm:$0xff]  }
  0x48   :  { %311 = vmatprep.subr.bf16.mxu0 %v1242_v9  ;;  %352 = vmatprep.subr.bf16.mxu1 %v1244_v10  ;;  %v1264_v23 = vld [vmem:[#allocation5 + $0x40] ss:$16 sps:$4 sm:$0xff]   ;;  %v1265_v24 = vld [vmem:[#allocation5 + $0x48] ss:$16 sps:$4 sm:$0xff]   ;;  %v1266_v25 = vld [vmem:[#allocation5 + $0x24] ss:$16 sps:$4 sm:$0xff]  }
  0x49   :  { %v1268_v26 = vld [vmem:[#allocation5 + $0x2c] ss:$16 sps:$4 sm:$0xff]   ;;  %v1270_v27 = vld [vmem:[#allocation5 + $0x20] ss:$16 sps:$4 sm:$0xff]   ;;  %v1271_v28 = vld [vmem:[#allocation5 + $0x28] ss:$16 sps:$4 sm:$0xff]  }
  0x4a   :  { %v1272_v29 = vld [vmem:[#allocation5 + $0x4] ss:$16 sps:$4 sm:$0xff]   ;;  %v1274_v30 = vld [vmem:[#allocation5 + $0xc] ss:$16 sps:$4 sm:$0xff]   ;;  %v1276_v31 = vld [vmem:[#allocation5] ss:$16 sps:$4 sm:$0xff]  }
  0x4b   :  { %312 = vmatpush1.bf16.msra.mxu0 %v1246_v11  ;;  %353 = vmatpush1.bf16.msra.mxu1 %v1247_v12  ;;  %v1277_v32 = vld [vmem:[#allocation5 + $0x8] ss:$16 sps:$4 sm:$0xff]   ;;  %v92_v35 = vld [vmem:[#allocation2] sm:$0xf]  ;;  %v1284_v40 = vld [vmem:[#allocation8 + $0x60] ss:$8 sps:$4 sm:$0xff]  }
  0x4c   :  { %313 = vmatprep.subr.bf16.mxu0 %v1248_v13  ;;  %354 = vmatprep.subr.bf16.mxu1 %v1250_v14  ;;  %v1280_v33 = vld [vmem:[#allocation8 + $0x74] ss:$8 sps:$4 sm:$0xff]   ;;  %v1278_v36 = vld [vmem:[#allocation8 + $0x70] ss:$8 sps:$4 sm:$0xff]   ;;  %v1286_v38 = vld [vmem:[#allocation8 + $0x64] ss:$8 sps:$4 sm:$0xff]  }
  0x4d   :  { %v1283_v34 = vld [vmem:[#allocation8 + $0x174] ss:$8 sps:$4 sm:$0xff]   ;;  %v1281_v37 = vld [vmem:[#allocation8 + $0x170] ss:$8 sps:$4 sm:$0xff]   ;;  %v1289_v39 = vld [vmem:[#allocation8 + $0x164] ss:$8 sps:$4 sm:$0xff]  }
  0x4e   :  { %v1287_v41 = vld [vmem:[#allocation8 + $0x160] ss:$8 sps:$4 sm:$0xff]   ;;  %v1292_v42 = vld [vmem:[#allocation8 + $0x54] ss:$8 sps:$4 sm:$0xff]   ;;  %v1290_v44 = vld [vmem:[#allocation8 + $0x50] ss:$8 sps:$4 sm:$0xff]  }
  0x4f   :  { %314 = vmatpush1.bf16.msra.mxu0 %v1252_v15  ;;  %355 = vmatpush1.bf16.msra.mxu1 %v1253_v16  ;;  %v1295_v43 = vld [vmem:[#allocation8 + $0x154] ss:$8 sps:$4 sm:$0xff]   ;;  %v1293_v45 = vld [vmem:[#allocation8 + $0x150] ss:$8 sps:$4 sm:$0xff]   ;;  %v1298_v46 = vld [vmem:[#allocation8 + $0x44] ss:$8 sps:$4 sm:$0xff]  }
  0x50   :  { %315 = vmatprep.subr.bf16.mxu0 %v1254_v17  ;;  %356 = vmatprep.subr.bf16.mxu1 %v1256_v18  ;;  %v1301_v47 = vld [vmem:[#allocation8 + $0x144] ss:$8 sps:$4 sm:$0xff]   ;;  %v1296_v48 = vld [vmem:[#allocation8 + $0x40] ss:$8 sps:$4 sm:$0xff]   ;;  %v1304_v50 = vld [vmem:[#allocation8 + $0x34] ss:$8 sps:$4 sm:$0xff]  }
  0x51   :  { %v1299_v49 = vld [vmem:[#allocation8 + $0x140] ss:$8 sps:$4 sm:$0xff]   ;;  %v1307_v51 = vld [vmem:[#allocation8 + $0x134] ss:$8 sps:$4 sm:$0xff]   ;;  %v1302_v52 = vld [vmem:[#allocation8 + $0x30] ss:$8 sps:$4 sm:$0xff]  }
  0x52   :  { %v1305_v53 = vld [vmem:[#allocation8 + $0x130] ss:$8 sps:$4 sm:$0xff]   ;;  %v1310_v54 = vld [vmem:[#allocation8 + $0x24] ss:$8 sps:$4 sm:$0xff]   ;;  %v1308_v56 = vld [vmem:[#allocation8 + $0x20] ss:$8 sps:$4 sm:$0xff]  }
  0x53   :  { %316 = vmatpush1.bf16.msra.mxu0 %v1258_v19  ;;  %357 = vmatpush1.bf16.msra.mxu1 %v1259_v20  ;;  %v1313_v55 = vld [vmem:[#allocation8 + $0x124] ss:$8 sps:$4 sm:$0xff]   ;;  %v1311_v57 = vld [vmem:[#allocation8 + $0x120] ss:$8 sps:$4 sm:$0xff]   ;;  %v1316_v58 = vld [vmem:[#allocation8 + $0x14] ss:$8 sps:$4 sm:$0xff]  }
  0x54   :  { %317 = vmatprep.subr.bf16.mxu0 %v1260_v21  ;;  %358 = vmatprep.subr.bf16.mxu1 %v1262_v22  ;;  %v1319_v59 = vld [vmem:[#allocation8 + $0x114] ss:$8 sps:$4 sm:$0xff]   ;;  %v1314_v60 = vld [vmem:[#allocation8 + $0x10] ss:$8 sps:$4 sm:$0xff]   ;;  %v1322_v62 = vld [vmem:[#allocation8 + $0x4] ss:$8 sps:$4 sm:$0xff]  }
  0x55   :  { %v1317_v61 = vld [vmem:[#allocation8 + $0x110] ss:$8 sps:$4 sm:$0xff]   ;;  %v1325_v63 = vld [vmem:[#allocation8 + $0x104] ss:$8 sps:$4 sm:$0xff]   ;;  %v1320_v0 = vld [vmem:[#allocation8] ss:$8 sps:$4 sm:$0xff]  }
  0x56   :  { %v1323_v1 = vld [vmem:[#allocation8 + $0x100] ss:$8 sps:$4 sm:$0xff]   ;;  %v1328_v2 = vld [vmem:[#allocation8 + $0xf4] ss:$8 sps:$4 sm:$0xff]   ;;  %v1326_v4 = vld [vmem:[#allocation8 + $0xf0] ss:$8 sps:$4 sm:$0xff]  }
  0x57   :  { %318 = vmatpush1.bf16.msra.mxu0 %v1264_v23  ;;  %359 = vmatpush1.bf16.msra.mxu1 %v1265_v24  ;;  %v1331_v3 = vld [vmem:[#allocation8 + $0x1f4] ss:$8 sps:$4 sm:$0xff]   ;;  %v1329_v5 = vld [vmem:[#allocation8 + $0x1f0] ss:$8 sps:$4 sm:$0xff]   ;;  %v1334_v6 = vld [vmem:[#allocation8 + $0xe4] ss:$8 sps:$4 sm:$0xff]  }
  0x58   :  { %319 = vmatprep.subr.bf16.mxu0 %v1266_v25  ;;  %360 = vmatprep.subr.bf16.mxu1 %v1268_v26  ;;  %v1337_v7 = vld [vmem:[#allocation8 + $0x1e4] ss:$8 sps:$4 sm:$0xff]   ;;  %v1332_v8 = vld [vmem:[#allocation8 + $0xe0] ss:$8 sps:$4 sm:$0xff]   ;;  %v1340_v10 = vld [vmem:[#allocation8 + $0xd4] ss:$8 sps:$4 sm:$0xff]  }
  0x59   :  { %v1335_v9 = vld [vmem:[#allocation8 + $0x1e0] ss:$8 sps:$4 sm:$0xff]   ;;  %v1343_v11 = vld [vmem:[#allocation8 + $0x1d4] ss:$8 sps:$4 sm:$0xff]   ;;  %v1338_v12 = vld [vmem:[#allocation8 + $0xd0] ss:$8 sps:$4 sm:$0xff]  }
  0x5a   :  { %v1341_v13 = vld [vmem:[#allocation8 + $0x1d0] ss:$8 sps:$4 sm:$0xff]   ;;  %v1346_v14 = vld [vmem:[#allocation8 + $0xc4] ss:$8 sps:$4 sm:$0xff]   ;;  %v1344_v16 = vld [vmem:[#allocation8 + $0xc0] ss:$8 sps:$4 sm:$0xff]  }
  0x5b   :  { %320 = vmatpush1.bf16.msra.mxu0 %v1270_v27  ;;  %361 = vmatpush1.bf16.msra.mxu1 %v1271_v28  ;;  %v1349_v15 = vld [vmem:[#allocation8 + $0x1c4] ss:$8 sps:$4 sm:$0xff]   ;;  %v1347_v17 = vld [vmem:[#allocation8 + $0x1c0] ss:$8 sps:$4 sm:$0xff]   ;;  %v1352_v18 = vld [vmem:[#allocation8 + $0xb4] ss:$8 sps:$4 sm:$0xff]  }
  0x5c   :  { %321 = vmatprep.subr.bf16.mxu0 %v1272_v29  ;;  %362 = vmatprep.subr.bf16.mxu1 %v1274_v30  ;;  %v1355_v19 = vld [vmem:[#allocation8 + $0x1b4] ss:$8 sps:$4 sm:$0xff]   ;;  %v1350_v20 = vld [vmem:[#allocation8 + $0xb0] ss:$8 sps:$4 sm:$0xff]   ;;  %v1358_v22 = vld [vmem:[#allocation8 + $0xa4] ss:$8 sps:$4 sm:$0xff]  }
  0x5d   :  { %v1353_v21 = vld [vmem:[#allocation8 + $0x1b0] ss:$8 sps:$4 sm:$0xff]   ;;  %v1361_v23 = vld [vmem:[#allocation8 + $0x1a4] ss:$8 sps:$4 sm:$0xff]   ;;  %v1356_v24 = vld [vmem:[#allocation8 + $0xa0] ss:$8 sps:$4 sm:$0xff]  }
  0x5e   :  { %v1359_v25 = vld [vmem:[#allocation8 + $0x1a0] ss:$8 sps:$4 sm:$0xff]   ;;  %v1364_v26 = vld [vmem:[#allocation8 + $0x94] ss:$8 sps:$4 sm:$0xff]   ;;  %v1362_v28 = vld [vmem:[#allocation8 + $0x90] ss:$8 sps:$4 sm:$0xff]  }
  0x5f   :  { %322 = vmatpush1.bf16.msra.mxu0 %v1276_v31  ;;  %363 = vmatpush1.bf16.msra.mxu1 %v1277_v32  ;;  %v1367_v27 = vld [vmem:[#allocation8 + $0x194] ss:$8 sps:$4 sm:$0xff]   ;;  %v1365_v29 = vld [vmem:[#allocation8 + $0x190] ss:$8 sps:$4 sm:$0xff]   ;;  %v1370_v30 = vld [vmem:[#allocation8 + $0x84] ss:$8 sps:$4 sm:$0xff]  }
  0x60   :  { %793 = vmatprep.subr.bf16.mxu0 %v1280_v33  ;;  %834 = vmatprep.subr.bf16.mxu1 %v1283_v34  ;;  %v1373_v31 = vld [vmem:[#allocation8 + $0x184] ss:$8 sps:$4 sm:$0xff]   ;;  %v1368_v32 = vld [vmem:[#allocation8 + $0x80] ss:$8 sps:$4 sm:$0xff]   ;;  %v1374_v34 = vld [vmem:[#allocation10 + $0x78] sm:$0xff]   ;;  %s1071_s8 = sshll.u32 %s1534_s30, 4  ;;  %s1072_s8 = int_to_ptr.vmem [resolvable:$true] %s1071_s8 }
  0x61   :  { %v1371_v33 = vld [vmem:[#allocation8 + $0x180] ss:$8 sps:$4 sm:$0xff]   ;;  %p1499_p12 = scmp.lt.s32.totalorder %s1072_s8, %s1072_s8 }
  0x62   :  { %340 = vmatmul.mubr.bf16.vlgmr.msra.gmra.mxu0 %v92_v35  ;;  %381 = vmatmul.mubr.bf16.vlgmr.msra.gmra.mxu1 %v92_v35  ;;  %v127_v35 = vlaneseq }
  0x63   :  { %794 = vmatpush1.bf16.msra.mxu0 %v1278_v36  ;;  %835 = vmatpush1.bf16.msra.mxu1 %v1281_v37 }
  0x64   :  { %795 = vmatprep.subr.bf16.mxu0 %v1286_v38  ;;  %836 = vmatprep.subr.bf16.mxu1 %v1289_v39  ;;  %v1590_v36 = vshrl.u32 %v127_v35, 7  ;;  %v125_v39 = vld [vmem:[#allocation7] sm:$0xf] }
  0x66   :  { %v129_v37 = vsub.s32 0, %v1590_v36  ;;  %v137_v38 = vsub.s32 2, %v1590_v36 }
  0x67   :  { %796 = vmatpush1.bf16.msra.mxu0 %v1284_v40  ;;  %837 = vmatpush1.bf16.msra.mxu1 %v1287_v41  ;;  %v133_v40 = vsub.s32 1, %v1590_v36  ;;  %v141_v41 = vsub.s32 3, %v1590_v36 }
  0x68   :  { %797 = vmatprep.subr.bf16.mxu0 %v1292_v42  ;;  %838 = vmatprep.subr.bf16.mxu1 %v1295_v43  ;;  %v130_v42 = vrot.slane %v125_v39, %v129_v37  ;;  %v138_v43 = vrot.slane %v125_v39, %v137_v38  ;;  %v1178_v38 = vld [vmem:[%s1615_s6] ss:$0 sm:$0xff]  ;;  %s1494_s6 = scalar_lea.vmem %s1072_s8, 128 }
  0x69   :  { %p1495_p11 = scmp.ne.s32.totalorder %s1072_s8, %s1494_s6  ;;  %p1500_p13 = scmp.lt.s32.totalorder %s1494_s6, %s1494_s6 }
  0x6b   :  { %798 = vmatpush1.bf16.msra.mxu0 %v1290_v44  ;;  %839 = vmatpush1.bf16.msra.mxu1 %v1293_v45  ;;  %v134_v44 = vrot.slane %v125_v39, %v133_v40  ;;  %v142_v45 = vrot.slane %v125_v39, %v141_v41  ;;  %p1501_p0 = por %p1500_p13, %p1499_p12 }
  0x6c   :  { %799 = vmatprep.subr.bf16.mxu0 %v1298_v46  ;;  %840 = vmatprep.subr.bf16.mxu1 %v1301_v47 }
  0x6d   :  { %p1502_p1 = pnand %p1501_p0, %p1495_p11 }
  0x6f   :  { %800 = vmatpush1.bf16.msra.mxu0 %v1296_v48  ;;  %841 = vmatpush1.bf16.msra.mxu1 %v1299_v49 }
  0x70   :  { %801 = vmatprep.subr.bf16.mxu0 %v1304_v50  ;;  %842 = vmatprep.subr.bf16.mxu1 %v1307_v51 }
  0x73   :  { %802 = vmatpush1.bf16.msra.mxu0 %v1302_v52  ;;  %843 = vmatpush1.bf16.msra.mxu1 %v1305_v53 }
  0x74   :  { %803 = vmatprep.subr.bf16.mxu0 %v1310_v54  ;;  %844 = vmatprep.subr.bf16.mxu1 %v1313_v55 }
  0x77   :  { %804 = vmatpush1.bf16.msra.mxu0 %v1308_v56  ;;  %845 = vmatpush1.bf16.msra.mxu1 %v1311_v57 }
  0x78   :  { %805 = vmatprep.subr.bf16.mxu0 %v1316_v58  ;;  %846 = vmatprep.subr.bf16.mxu1 %v1319_v59 }
  0x7b   :  { %806 = vmatpush1.bf16.msra.mxu0 %v1314_v60  ;;  %847 = vmatpush1.bf16.msra.mxu1 %v1317_v61 }
  0x7c   :  { %807 = vmatprep.subr.bf16.mxu0 %v1322_v62  ;;  %848 = vmatprep.subr.bf16.mxu1 %v1325_v63 }
  0x7f   :  { %808 = vmatpush1.bf16.msra.mxu0 %v1320_v0  ;;  %849 = vmatpush1.bf16.msra.mxu1 %v1323_v1  ;;  %v1375_v1 = vld [vmem:[#allocation10 + $0x38] sm:$0xff]  }
  0x80   :  { %809 = vmatprep.subr.bf16.mxu0 %v1328_v2  ;;  %850 = vmatprep.subr.bf16.mxu1 %v1331_v3  ;;  %v1376_v3 = vld [vmem:[#allocation10 + $0x70] sm:$0xff]  }
  0x83   :  { %810 = vmatpush2.bf16.msra.mxu0 %v1326_v4  ;;  %851 = vmatpush2.bf16.msra.mxu1 %v1329_v5  ;;  %v1377_v4 = vld [vmem:[#allocation10 + $0x30] sm:$0xff]   ;;  %v1378_v5 = vld [vmem:[#allocation10 + $0x68] sm:$0xff]  }
  0x84   :  { %811 = vmatprep.subr.bf16.mxu0 %v1334_v6  ;;  %852 = vmatprep.subr.bf16.mxu1 %v1337_v7  ;;  %v1379_v6 = vld [vmem:[#allocation10 + $0x28] sm:$0xff]   ;;  %v1380_v7 = vld [vmem:[#allocation10 + $0x60] sm:$0xff]  }
  0x87   :  { %812 = vmatpush2.bf16.msra.mxu0 %v1332_v8  ;;  %853 = vmatpush2.bf16.msra.mxu1 %v1335_v9  ;;  %v1381_v8 = vld [vmem:[#allocation10 + $0x20] sm:$0xff]   ;;  %v1382_v9 = vld [vmem:[#allocation10 + $0x58] sm:$0xff]  }
  0x88   :  { %813 = vmatprep.subr.bf16.mxu0 %v1340_v10  ;;  %854 = vmatprep.subr.bf16.mxu1 %v1343_v11  ;;  %v1383_v10 = vld [vmem:[#allocation10 + $0x18] sm:$0xff]   ;;  %v1384_v11 = vld [vmem:[#allocation10 + $0x50] sm:$0xff]  }
  0x8b   :  { %814 = vmatpush2.bf16.msra.mxu0 %v1338_v12  ;;  %855 = vmatpush2.bf16.msra.mxu1 %v1341_v13  ;;  %v1385_v12 = vld [vmem:[#allocation10 + $0x10] sm:$0xff]   ;;  %v1386_v13 = vld [vmem:[#allocation10 + $0x48] sm:$0xff]  }
  0x8c   :  { %815 = vmatprep.subr.bf16.mxu0 %v1346_v14  ;;  %856 = vmatprep.subr.bf16.mxu1 %v1349_v15  ;;  %v1387_v14 = vld [vmem:[#allocation10 + $0x8] sm:$0xff]   ;;  %v1388_v15 = vld [vmem:[#allocation10 + $0x40] sm:$0xff]  }
  0x8f   :  { %816 = vmatpush2.bf16.msra.mxu0 %v1344_v16  ;;  %857 = vmatpush2.bf16.msra.mxu1 %v1347_v17  ;;  %v1389_v16 = vld [vmem:[#allocation10] sm:$0xff]   ;;  %v461_v17 = vld [vmem:[%s1613_s4] sm:$0x3] }
  0x90   :  { %817 = vmatprep.subr.bf16.mxu0 %v1352_v18  ;;  %858 = vmatprep.subr.bf16.mxu1 %v1355_v19  ;;  %v466_v18 = vrot.slane %v461_v17, %v129_v37  ;;  %v470_v19 = vrot.slane %v461_v17, %v133_v40 }
  0x93   :  { %818 = vmatpush2.bf16.msra.mxu0 %v1350_v20  ;;  %859 = vmatpush2.bf16.msra.mxu1 %v1353_v21 }
  0x94   :  { %819 = vmatprep.subr.bf16.mxu0 %v1358_v22  ;;  %860 = vmatprep.subr.bf16.mxu1 %v1361_v23 }
  0x97   :  { %820 = vmatpush2.bf16.msra.mxu0 %v1356_v24  ;;  %861 = vmatpush2.bf16.msra.mxu1 %v1359_v25 }
  0x98   :  { %821 = vmatprep.subr.bf16.mxu0 %v1364_v26  ;;  %862 = vmatprep.subr.bf16.mxu1 %v1367_v27 }
  0x9b   :  { %822 = vmatpush2.bf16.msra.mxu0 %v1362_v28  ;;  %863 = vmatpush2.bf16.msra.mxu1 %v1365_v29 }
  0x9c   :  { %823 = vmatprep.subr.bf16.mxu0 %v1370_v30  ;;  %864 = vmatprep.subr.bf16.mxu1 %v1373_v31 }
  0x9f   :  { %824 = vmatpush2.bf16.msra.mxu0 %v1368_v32  ;;  %865 = vmatpush2.bf16.msra.mxu1 %v1371_v33 }
  0xa0   :  { %1195 = vmatprep.subr.bf16.mxu0 %v1374_v34 }
 0x122   :  { %v341_v46 = vpop.f32.mrf.mxu0  ;;  %v382_v47 = vpop.f32.mrf.mxu1 }
 0x123   :  { %v342_v48 = vadd.f32 %v341_v46, %v130_v42  ;;  %v383_v49 = vadd.f32 %v382_v47, %v138_v43 }
 0x124   :  { %v343_v50 = vpop.f32.mrf.mxu0  ;;  %v384_v51 = vpop.f32.mrf.mxu1 }
 0x125   :  { %v391_v52 = vmax.f32 %v383_v49, 0.0  ;;  %v344_v53 = vadd.f32 %v343_v50, %v134_v44  ;;  %v385_v54 = vadd.f32 %v384_v51, %v142_v45  ;;  %v389_v55 = vmax.f32 %v342_v48, 0.0 }
 0x126   :  { %v345_v56 = vpop.f32.mrf.mxu0  ;;  %v386_v57 = vpop.f32.mrf.mxu1 }
 0x127   :  { %v390_v58 = vmax.f32 %v344_v53, 0.0  ;;  %v392_v59 = vmax.f32 %v385_v54, 0.0  ;;  %v395_v60 = vpack.c.bf16 %v391_v52, %v391_v52  ;;  %v393_v2 = vpack.c.bf16 %v389_v55, %v389_v55 }
 0x128   :  { %v346_v61 = vpop.f32.mrf.mxu0  ;;  %v387_v62 = vpop.f32.mrf.mxu1 }
 0x129   :  { %v394_v63 = vpack.c.bf16 %v390_v58, %v390_v58  ;;  %v396_v0 = vpack.c.bf16 %v392_v59, %v392_v59 }
 0x12b   :  { %825 = vmatprep.mubr.bf16.mxu0 %v394_v63  ;;  %866 = vmatprep.mubr.bf16.mxu1 %v396_v0 }
 0x12c   :  { %826 = vmatmul.mubr.bf16.vlgmr.msra.gmra.mxu0 %v393_v2  ;;  %867 = vmatmul.mubr.bf16.vlgmr.msra.gmra.mxu1 %v395_v60 }
 0x12d   :  { %1196 = vmatpush3.bf16.msra.mxu0 %v1375_v1 }
 0x12e   :  { %1197 = vmatprep.subr.bf16.mxu0 %v1376_v3 }
 0x131   :  { %1198 = vmatpush3.bf16.msra.mxu0 %v1377_v4 }
 0x132   :  { %1199 = vmatprep.subr.bf16.mxu0 %v1378_v5 }
 0x135   :  { %1200 = vmatpush3.bf16.msra.mxu0 %v1379_v6 }
 0x136   :  { %1201 = vmatprep.subr.bf16.mxu0 %v1380_v7 }
 0x139   :  { %1202 = vmatpush3.bf16.msra.mxu0 %v1381_v8 }
 0x13a   :  { %1203 = vmatprep.subr.bf16.mxu0 %v1382_v9 }
 0x13d   :  { %1204 = vmatpush3.bf16.msra.mxu0 %v1383_v10 }
 0x13e   :  { %1205 = vmatprep.subr.bf16.mxu0 %v1384_v11 }
 0x141   :  { %1206 = vmatpush3.bf16.msra.mxu0 %v1385_v12 }
 0x142   :  { %1207 = vmatprep.subr.bf16.mxu0 %v1386_v13 }
 0x145   :  { %1208 = vmatpush3.bf16.msra.mxu0 %v1387_v14 }
 0x146   :  { %1209 = vmatprep.subr.bf16.mxu0 %v1388_v15 }
 0x149   :  { %1210 = vmatpush3.bf16.msra.mxu0 %v1389_v16 }
 0x1ec   :  { %v827_v20 = vpop.f32.mrf.mxu0  ;;  %v868_v21 = vpop.f32.mrf.mxu1 }
 0x1ed   :  { %v828_v22 = vadd.f32 %v827_v20, %v466_v18 }
 0x1ee   :  { %v829_v23 = vpop.f32.mrf.mxu0  ;;  %v870_v24 = vpop.f32.mrf.mxu1 }
 0x1ef   :  { %v869_v25 = vadd.f32 %v868_v21, %v828_v22  ;;  %v830_v26 = vadd.f32 %v829_v23, %v470_v19 }
 0x1f0   :  { %v831_v27 = vpop.f32.mrf.mxu0  ;;  %v872_v28 = vpop.f32.mrf.mxu1 }
 0x1f1   :  { %v871_v29 = vadd.f32 %v870_v24, %v830_v26  ;;  %v875_v30 = vmax.f32 %v869_v25, 0.0 }
 0x1f2   :  { %v832_v31 = vpop.f32.mrf.mxu0  ;;  %v873_v32 = vpop.f32.mrf.mxu1 }
 0x1f3   :  { %v876_v33 = vmax.f32 %v871_v29, 0.0  ;;  %v877_v35 = vpack.c.bf16 %v875_v30, %v875_v30 }
 0x1f5   :  { %v878_v34 = vpack.c.bf16 %v876_v33, %v876_v33 }
 0x1f7   :  { %1046 = vmatprep.mubr.bf16.mxu0 %v878_v34 }
 0x1f8   :  { %1047 = vmatmul.mubr.bf16.vlgmr.msra.gmra.mxu0 %v877_v35 }
 0x2b8   :  { %v1211_v36 = vpop.f32.mrf.mxu0 }
 0x2ba   :  { %v1212_v37 = vpop.f32.mrf.mxu0 }
 0x2bb   :  { %v1213_v39 = vadd.f32 %v1212_v37, %v1211_v36 }
 0x2bc   :  { %v1214_v40 = vpop.f32.mrf.mxu0 }
 0x2bd   :  { %v1049_v41 = vadd.f32 %v1213_v39, %v1178_v38 }
 0x2be   :  { %v1215_v42 = vpop.f32.mrf.mxu0 }
 0x2bf   :  { %1054 = vmax.xlane.f32.xlu0 %v1049_v41 }
 0x348   :  { %v1055_v43 = vpop.xlane.xlu0 %1054 }
 0x349   :  { %v1056_v44 = vsub.f32 %v1049_v41, %v1055_v43 }
 0x34b   :  { %v1057_v45 = vmul.f32 1.442695, %v1056_v44 }
 0x34d   :  { %1390 = vpow2.f32 %v1057_v45 }
 0x35a   :  { %v1391_v46 = vpop.eup %1390 }
 0x35b   :  { %1059 = vadd.xlane.f32.xlu0 %v1391_v46 }
 0x3e4   :  { %v1060_v47 = vpop.xlane.xlu0 %1059 }
 0x3e5   :  { %1392 = vlog2.f32 %v1060_v47 }
 0x3f2   :  { %v1393_v48 = vpop.eup %1392 }
 0x3f3   :  { %v1062_v49 = vmul.f32 0.6931472, %v1393_v48 }
 0x3f5   :  { %v1063_v50 = vsub.f32 %v1056_v44, %v1062_v49 }
 0x3f7   :  { %1064 = vst [vmem:[#allocation11] sm:$0xff] %v1063_v50 }
 0x3f8   :  { %1505 = shalt.err (!%p1502_p1)
}
 0x3f9   :  { %1074 = dma.vmem_to_hbm [thread:$0]  %s1072_s8, 128, %s1616_s7, [#allocation4]  }
 0x3fa   :  { %1520 = dma.done.wait [#allocation4], 128  }
 0x3fb   :  { %1521 = vsyncadd [#allocation4], 4294967168 }
 0x3fc   :  { %1078 = vsyncpa [#allocation3], 1 }
 0x3fd   :  { %1079 = vsyncpa [#allocation6], 1 }
 0x3fe   :  { %1080 = vsyncpa [#allocation9], 1 }
 0x3ff   :  { %1081 = vsyncpa [#allocation4], 1 }

</bundles_post_ra>
